<compile_context>
chip_gen: v7x
topology: tpu7x:2x2x1
jax: 0.10.0
libtpu: 0.0.40
codegen_flags: <defaults>
</compile_context>

<pallas_src>
import math
import functools

import jax
import jax.numpy as jnp
from jax import lax
from jax.experimental import pallas as pl
from jax.experimental.pallas import tpu as pltpu


# --------------------------------------------------------------------------
# Generation-aware VMEM budget / tile candidates
# --------------------------------------------------------------------------

def _detect_vmem_limit():
    # v5e / v6e have 128 MiB physical VMEM -> raise the scoped limit to 64 MiB.
    # v7x (64 MiB physical) and anything unknown -> conservative 32 MiB.
    try:
        info = pltpu.get_tpu_info()
        cap = getattr(info, "vmem_capacity_bytes", None)
        if cap is not None and cap >= 100 * 1024 * 1024:
            return 64 * 1024 * 1024
    except Exception:
        pass
    return 32 * 1024 * 1024


_VMEM_LIMIT = _detect_vmem_limit()
_BIG_VMEM = _VMEM_LIMIT >= 64 * 1024 * 1024

_LN_TILES = ((4096, 2048, 1024, 512, 256, 128, 64, 32, 16, 8) if _BIG_VMEM
             else (1024, 512, 256, 128, 64, 32, 16, 8))
_MLP_TILES = ((2048, 1024, 512, 256, 128, 64, 32, 16, 8) if _BIG_VMEM
              else (1024, 512, 256, 128, 64, 32, 16, 8))
_LSH_TILES = (2048, 1024, 512, 256, 128) if _BIG_VMEM else (1024, 512, 256, 128)
_WIN_TILES = (64, 32, 16, 8, 4, 2, 1) if _BIG_VMEM else (32, 16, 8, 4, 2, 1)
_CMB_TILES = (4096, 2048, 1024, 512, 256, 128) if _BIG_VMEM else (1024, 512, 256, 128)


def _cparams(*sem):
    return pltpu.CompilerParams(dimension_semantics=sem,
                                vmem_limit_bytes=_VMEM_LIMIT)


def _pick_tile(n, candidates):
    for t in candidates:
        if n % t == 0:
            return t
    # Fallback: largest divisor of n not exceeding the largest candidate
    # (avoids the single-giant-block VMEM hazard of returning n outright).
    cap = max(candidates)
    for t in range(min(n, cap), 0, -1):
        if n % t == 0:
            return t
    return n


def _pad_rows(x2d, mult):
    n = x2d.shape[0]
    pad = (-n) % mult
    if pad:
        x2d = jnp.pad(x2d, ((0, pad), (0, 0)))
    return x2d, n


# --------------------------------------------------------------------------
# LayerNorm (norm1)
# --------------------------------------------------------------------------

def _layernorm_kernel(x_ref, g_ref, b_ref, o_ref, *, eps):
    x = x_ref[...]                                       # (T, C) f32
    mu = jnp.mean(x, axis=-1, keepdims=True)
    var = jnp.mean((x - mu) ** 2, axis=-1, keepdims=True)
    y = (x - mu) * lax.rsqrt(var + eps) * g_ref[...] + b_ref[...]
    o_ref[...] = y.astype(o_ref.dtype)


def layernorm(x2d, gamma, beta, *, eps=1e-5, out_dtype=jnp.float32):
    N0, C = x2d.shape
    x2d, N0 = _pad_rows(x2d, 256)                        # robust tiling for awkward row counts
    N = x2d.shape[0]
    tile = _pick_tile(N, _LN_TILES)
    out = pl.pallas_call(
        functools.partial(_layernorm_kernel, eps=eps),
        out_shape=jax.ShapeDtypeStruct((N, C), out_dtype),
        grid=(N // tile,),
        in_specs=[pl.BlockSpec((tile, C), lambda i: (i, 0)),
                  pl.BlockSpec((1, C), lambda i: (0, 0)),
                  pl.BlockSpec((1, C), lambda i: (0, 0))],
        out_specs=pl.BlockSpec((tile, C), lambda i: (i, 0)),
        compiler_params=_cparams("parallel"),
    )(x2d, gamma.reshape(1, C), beta.reshape(1, C))
    return out[:N0]


# --------------------------------------------------------------------------
# LSH bucketing (rotation matmul + per-hash argmax), lane-dense output
# --------------------------------------------------------------------------

def _lsh_kernel(x_ref, rot_ref, o_ref, *, n_hashes, hash_buckets):
    x = x_ref[0]                                         # (T, C) bf16
    rot = rot_ref[...]                                   # (n_hashes*HB, C) bf16
    # rt[k, t] = sum_c rot[k, c] * x[t, c]  -> buckets on sublanes, tokens on lanes
    rt = lax.dot_general(rot, x, (((1,), (1,)), ((), ())),
                         preferred_element_type=jnp.float32)   # (n_hashes*HB, T)
    t = x.shape[0]
    iota = lax.broadcasted_iota(jnp.int32, (hash_buckets, t), 0)
    rows = []
    for h in range(n_hashes):
        chunk = rt[h * hash_buckets:(h + 1) * hash_buckets, :]    # (HB, T)
        m = jnp.max(chunk, axis=0, keepdims=True)
        # first-occurrence argmax built from max/where/min (Pallas-safe)
        idx = jnp.min(jnp.where(chunk == m, iota, hash_buckets),
                      axis=0, keepdims=True)                      # (1, T) int32
        rows.append(idx + h * hash_buckets)
    o_ref[0] = jnp.concatenate(rows, axis=0)             # (n_hashes, T), lane-dense store


def lsh_hash_codes(x, rot_t, *, n_hashes, hash_buckets):
    """x: (Bp, L, C) -> hash codes (Bp, n_hashes*L) (hash-major, like torch)."""
    Bp, L, C = x.shape
    tile = _pick_tile(L, _LSH_TILES)
    codes = pl.pallas_call(
        functools.partial(_lsh_kernel, n_hashes=n_hashes,
                          hash_buckets=hash_buckets),
        out_shape=jax.ShapeDtypeStruct((Bp, n_hashes, L), jnp.int32),
        grid=(Bp, L // tile),
        in_specs=[pl.BlockSpec((1, tile, C), lambda b, i: (b, i, 0)),
                  pl.BlockSpec((n_hashes * hash_buckets, C), lambda b, i: (0, 0))],
        out_specs=pl.BlockSpec((1, n_hashes, tile), lambda b, i: (b, 0, i)),
        compiler_params=_cparams("parallel", "parallel"),
    )(x.astype(jnp.bfloat16), rot_t)
    return codes.reshape(Bp, n_hashes * L)


# --------------------------------------------------------------------------
# Per-window multi-head attention (fused QKV + softmax + attn@V + logsumexp)
# --------------------------------------------------------------------------

def _window_attn_kernel(x_ref, w_ref, b_ref, o_ref, lse_ref, *, num_heads, scale):
    xw = x_ref[...]                                      # (WB, wa, C) bf16
    wb, wa, C = xw.shape
    hd = C // num_heads
    # one flat 2-D QKV matmul (no per-window weight broadcast), bf16 x bf16 -> f32.
    # Cast to bf16 right after the bias add: halves the largest live temporary.
    qkv = (jnp.dot(xw.reshape(wb * wa, C), w_ref[...],
                   preferred_element_type=jnp.float32)
           + b_ref[...]).astype(jnp.bfloat16)
    qkv = qkv.reshape(wb, wa, 3 * C)
    # TODO(synk): full head-batching ('bqhd,bkhd->bhqk') needs a lane->sublane relayout of
    # qkv; kept as a short per-head loop with minimized f32 live ranges instead.
    outs, lses = [], []
    for h in range(num_heads):
        q = qkv[:, :, h * hd:(h + 1) * hd]                        # bf16
        k = qkv[:, :, C + h * hd:C + (h + 1) * hd]                # bf16
        v = qkv[:, :, 2 * C + h * hd:2 * C + (h + 1) * hd]        # bf16
        # scale applied to the f32 logits (cheaper and more accurate than scaling bf16 q)
        attn = jnp.einsum('bqd,bkd->bqk', q, k,
                          preferred_element_type=jnp.float32) * scale   # (WB, wa, wa) f32
        m = jnp.max(attn, axis=-1, keepdims=True)
        e = jnp.exp(attn - m)
        s = jnp.sum(e, axis=-1, keepdims=True)
        # Unnormalized e @ V, then normalize the (wa, hd) result: wa/hd x fewer VPU multiplies
        # than normalizing the (wa, wa) probability matrix.
        o_h = jnp.einsum('bqk,bkd->bqd', e.astype(jnp.bfloat16), v,
                         preferred_element_type=jnp.float32)             # (WB, wa, hd) f32
        o_h = o_h * pl.reciprocal(s, approx=True)
        outs.append(o_h.astype(jnp.bfloat16))
        lses.append((m + jnp.log(s))[:, :, 0])                           # (WB, wa) f32
    # single full-width stores: out is the full (WB, wa, C) block; lse is lane-dense
    # (WB, 1, num_heads*wa) (heads concatenated along the lane axis).
    o_ref[...] = jnp.concatenate(outs, axis=-1).astype(o_ref.dtype)
    lse_ref[...] = jnp.concatenate(lses, axis=-1).reshape(wb, 1, num_heads * wa)


def window_attention(x_windows, wqkv_bf16, bqkv, *, num_heads, scale):
    NW, wa, C = x_windows.shape
    win_block = _pick_tile(NW, _WIN_TILES)
    out, lse = pl.pallas_call(
        functools.partial(_window_attn_kernel, num_heads=num_heads, scale=scale),
        out_shape=(jax.ShapeDtypeStruct((NW, wa, C), jnp.bfloat16),
                   jax.ShapeDtypeStruct((NW, 1, num_heads * wa), jnp.float32)),
        grid=(NW // win_block,),
        in_specs=[pl.BlockSpec((win_block, wa, C), lambda i: (i, 0, 0)),
                  pl.BlockSpec((C, 3 * C), lambda i: (0, 0)),
                  pl.BlockSpec((1, 3 * C), lambda i: (0, 0))],
        out_specs=(pl.BlockSpec((win_block, wa, C), lambda i: (i, 0, 0)),
                   pl.BlockSpec((win_block, 1, num_heads * wa), lambda i: (i, 0, 0))),
        compiler_params=_cparams("parallel"),
    )(x_windows.astype(jnp.bfloat16), wqkv_bf16,
      bqkv.reshape(1, -1).astype(jnp.float32))
    return out, lse


# --------------------------------------------------------------------------
# Fused cross-hash softmax-combine + output projection (streaming, VPU-only combine)
# --------------------------------------------------------------------------

def _combine_proj_kernel(x_ref, lse_ref, w_ref, b_ref, o_ref, *, num_heads):
    lse = lse_ref[0]                                     # (n_hashes, T, nh) f32
    n = lse.shape[0]
    T = lse.shape[1]
    C = x_ref.shape[-1]
    hd = C // num_heads
    m = jnp.max(lse, axis=0, keepdims=True)
    e = jnp.exp(lse - m)
    probs = e / jnp.sum(e, axis=0, keepdims=True)        # softmax over hash rounds (f32, exact)
    # Streaming accumulation over the tiny n_hashes dim: per-head weights broadcast to
    # per-channel on the VPU (no (n*T, nh)@(nh, C) MXU expansion matmul, no f32 copy of
    # the whole (n, T, C) block held live).
    fused = jnp.zeros((T, C), jnp.float32)
    for h in range(n):
        xh = x_ref[0, h].astype(jnp.float32)             # (T, C)
        ph = probs[h]                                    # (T, nh)
        w_tc = jnp.concatenate(
            [pl.broadcast_to(ph[:, j:j + 1], (T, hd)) for j in range(num_heads)],
            axis=-1)                                     # (T, C) per-channel weights
        fused = fused + xh * w_tc
    out = jnp.dot(fused.astype(jnp.bfloat16), w_ref[...],
                  preferred_element_type=jnp.float32) + b_ref[...]
    o_ref[0] = out.astype(o_ref.dtype)


def combine_project(x_un, lse_un, proj_w_bf16, proj_b, *, num_heads):
    Bp, n_hashes, L, C = x_un.shape
    tile = _pick_tile(L, _CMB_TILES)
    # bf16 output: halves the attn-branch writeback; the residual add upcasts outside.
    return pl.pallas_call(
        functools.partial(_combine_proj_kernel, num_heads=num_heads),
        out_shape=jax.ShapeDtypeStruct((Bp, L, C), jnp.bfloat16),
        grid=(Bp, L // tile),
        in_specs=[pl.BlockSpec((1, n_hashes, tile, C), lambda b, i: (b, 0, i, 0)),
                  pl.BlockSpec((1, n_hashes, tile, num_heads), lambda b, i: (b, 0, i, 0)),
                  pl.BlockSpec((C, C), lambda b, i: (0, 0)),
                  pl.BlockSpec((1, C), lambda b, i: (0, 0))],
        out_specs=pl.BlockSpec((1, tile, C), lambda b, i: (b, i, 0)),
        compiler_params=_cparams("parallel", "parallel"),
    )(x_un, lse_un, proj_w_bf16, proj_b.reshape(1, -1))


# --------------------------------------------------------------------------
# Fused norm2 + MLP(GELU) + residual
# --------------------------------------------------------------------------

def _gelu_tanh(x):
    # tanh-approximate GELU: tanh lowers to the EUP (separate VLIW slot), offloading the
    # VALU vs. the erf polynomial.  ~1e-3 max deviation from nn.GELU()'s exact erf.
    c = math.sqrt(2.0 / math.pi)
    return 0.5 * x * (1.0 + jnp.tanh(c * (x + 0.044715 * x * x * x)))


def _mlp_block_kernel(x_ref, g_ref, bn_ref, w1_ref, b1_ref, w2_ref, b2_ref,
                      o_ref, *, eps):
    x = x_ref[...]                                       # (T, C) f32
    mu = jnp.mean(x, axis=-1, keepdims=True)
    var = jnp.mean((x - mu) ** 2, axis=-1, keepdims=True)
    y = (x - mu) * lax.rsqrt(var + eps) * g_ref[...] + bn_ref[...]      # norm2
    h = jnp.dot(y.astype(jnp.bfloat16), w1_ref[...],
                preferred_element_type=jnp.float32) + b1_ref[...]
    h = _gelu_tanh(h)
    o_ref[...] = x + jnp.dot(h.astype(jnp.bfloat16), w2_ref[...],
                             preferred_element_type=jnp.float32) + b2_ref[...]


def mlp_residual(x2d, g, bn, w1_bf16, b1, w2_bf16, b2, *, eps=1e-5):
    N0, C = x2d.shape
    Hh = w1_bf16.shape[1]
    x2d, N0 = _pad_rows(x2d, 256)
    N = x2d.shape[0]
    tile = _pick_tile(N, _MLP_TILES)
    out = pl.pallas_call(
        functools.partial(_mlp_block_kernel, eps=eps),
        out_shape=jax.ShapeDtypeStruct((N, C), jnp.float32),
        grid=(N // tile,),
        in_specs=[pl.BlockSpec((tile, C), lambda i: (i, 0)),
                  pl.BlockSpec((1, C), lambda i: (0, 0)),
                  pl.BlockSpec((1, C), lambda i: (0, 0)),
                  pl.BlockSpec((C, Hh), lambda i: (0, 0)),
                  pl.BlockSpec((1, Hh), lambda i: (0, 0)),
                  pl.BlockSpec((Hh, C), lambda i: (0, 0)),
                  pl.BlockSpec((1, C), lambda i: (0, 0))],
        out_specs=pl.BlockSpec((tile, C), lambda i: (i, 0)),
        compiler_params=_cparams("parallel"),
    )(x2d, g.reshape(1, -1), bn.reshape(1, -1),
      w1_bf16, b1.reshape(1, -1), w2_bf16, b2.reshape(1, -1))
    return out[:N0]


# --------------------------------------------------------------------------
# Plain-JAX glue (reshapes / permutes / gathers / padding)
# --------------------------------------------------------------------------

def window_partition(x, window_size):
    B, H, W, C = x.shape
    x = x.reshape(B, H // window_size, window_size, W // window_size, window_size, C)
    return jnp.transpose(x, (0, 1, 3, 2, 4, 5)).reshape(-1, window_size, window_size, C)


def window_reverse(windows, window_size, H, W):
    B = windows.shape[0] // (H * W // window_size // window_size)
    x = windows.reshape(B, H // window_size, W // window_size, window_size,
                        window_size, -1)
    return jnp.transpose(x, (0, 1, 3, 2, 4, 5)).reshape(B, H, W, -1)


def batched_index_select(values, indices):
    return jnp.take_along_axis(values, indices[:, :, None], axis=1)


def reflect_pad_partition(x, H, W, pad_h, pad_w):
    """Mirror of NonLocalTransformerBlock's reflect-padding logic (BHWC)."""
    if pad_h < H and pad_w < W:
        if pad_h or pad_w:
            x = jnp.pad(x, ((0, 0), (0, pad_h), (0, pad_w), (0, 0)), mode='reflect')
        return x
    th, ph = H, pad_h
    while ph >= th:
        x = jnp.pad(x, ((0, 0), (0, th - 1), (0, 0), (0, 0)), mode='reflect')
        ph -= th - 1
        th = 2 * th - 1
    if ph:
        x = jnp.pad(x, ((0, 0), (0, ph), (0, 0), (0, 0)), mode='reflect')
    tw, pw = W, pad_w
    while pw >= tw:
        x = jnp.pad(x, ((0, 0), (0, 0), (0, tw - 1), (0, 0)), mode='reflect')
        pw -= tw - 1
        tw = 2 * tw - 1
    if pw:
        x = jnp.pad(x, ((0, 0), (0, 0), (0, pw), (0, 0)), mode='reflect')
    return x


def make_random_rotations(key, feat_dim, n_hashes, hash_buckets):
    # Deterministic stand-in for torch.nn.init.orthogonal_ (semi-orthogonal).
    # Returned pre-transposed as (n_hashes*hash_buckets, feat_dim) bf16 for the kernel.
    mats = []
    for k in jax.random.split(key, n_hashes):
        a = jax.random.normal(k, (hash_buckets, feat_dim), dtype=jnp.float32)
        q, _ = jnp.linalg.qr(a)                          # (HB, feat_dim)
        mats.append(q)
    return jnp.concatenate(mats, axis=0).astype(jnp.bfloat16)


# --------------------------------------------------------------------------
# NonLocalWindowAttention forward
# --------------------------------------------------------------------------

def nonlocal_window_attention(x, params, *, window_size, num_heads, n_hashes, rot_key):
    Bp, L, C = x.shape
    wa = window_size[0] * window_size[1]
    hash_buckets = L // wa
    hd = C // num_heads
    scale = hd ** (-0.5)

    # LSH bucketing (Pallas) + sort routing (JAX gathers)
    rot_t = make_random_rotations(rot_key, C, n_hashes, hash_buckets)
    hash_codes = lsh_hash_codes(x, rot_t, n_hashes=n_hashes,
                                hash_buckets=hash_buckets)       # (Bp, n_hashes*L)
    indices = jnp.argsort(hash_codes, axis=-1)
    undo_sort = jnp.argsort(indices, axis=-1)
    mod_indices = indices % L

    # TODO(synk): fuse this gather into the attention kernel (per-row DMA gather driven by
    # scalar-prefetched mod_indices) instead of materializing the n_hashes-expanded x_sorted.
    x_bf = x.astype(jnp.bfloat16)
    x_sorted = batched_index_select(x_bf, mod_indices)           # (Bp, n_hashes*L, C) bf16
    x_windows = x_sorted.reshape(Bp * n_hashes * hash_buckets, wa, C)

    # per-window multi-head attention + lane-dense logsumexp (Pallas)
    out_w, lse_w = window_attention(x_windows, params['qkv_w'].astype(jnp.bfloat16),
                                    params['qkv_b'], num_heads=num_heads, scale=scale)
    NW = out_w.shape[0]
    x_sort = out_w.reshape(Bp, n_hashes * L, C)                          # bf16
    lse = jnp.transpose(lse_w.reshape(NW, num_heads, wa),
                        (0, 2, 1)).reshape(Bp, n_hashes * L, num_heads)  # f32

    # TODO(synk): fuse the undo_sort gather into combine_project (scalar-prefetch indexed DMA)
    # instead of materializing x_un / lse_un in HBM.
    x_un = batched_index_select(x_sort, undo_sort).reshape(Bp, n_hashes, L, C)
    lse_un = batched_index_select(lse, undo_sort).reshape(Bp, n_hashes, L, num_heads)
    out = combine_project(x_un, lse_un, params['proj_w'].astype(jnp.bfloat16),
                          params['proj_b'], num_heads=num_heads)
    return out                                                   # (Bp, L, C) bf16


# --------------------------------------------------------------------------
# NonLocalTransformerBlock forward
# --------------------------------------------------------------------------

def nonlocal_transformer_block(x, x_size, params, *, dim, num_heads, window_size,
                               n_hashes, partition_size=128, rot_key=None):
    H, W = x_size
    B, L, C = x.shape
    assert C == dim and L == H * W
    shortcut = x

    # norm1 (Pallas LayerNorm) — bf16 output feeds only the attention branch
    xn = layernorm(x.reshape(B * L, C), params['norm1_g'], params['norm1_b'],
                   out_dtype=jnp.bfloat16).reshape(B, L, C)

    # window_size override (module __init__ behaviour)
    ws = min(H, W) if min(H, W) <= window_size else window_size

    # patch partition (reflect pad to multiple of partition_size)
    xi = xn.reshape(B, H, W, C)
    pad_h = (partition_size - H % partition_size) % partition_size
    pad_w = (partition_size - W % partition_size) % partition_size
    xi = reflect_pad_partition(xi, H, W, pad_h, pad_w)
    Hp, Wp = H + pad_h, W + pad_w
    xw = window_partition(xi, partition_size).reshape(
        -1, partition_size * partition_size, C)

    # non-local LSH window attention
    xw = nonlocal_window_attention(xw, params, window_size=(ws, ws),
                                   num_heads=num_heads, n_hashes=n_hashes,
                                   rot_key=rot_key)

    # undo partition, crop padding
    xw = xw.reshape(-1, partition_size, partition_size, C)
    xi = window_reverse(xw, partition_size, Hp, Wp)
    xi = xi[:, :H, :W, :]
    x_attn = xi.reshape(B, H * W, C)

    # residual (drop_path = Identity at rate 0; bf16 attn branch upcasts in the add),
    # then fused norm2 + MLP + residual
    x = shortcut + x_attn.astype(jnp.float32)
    x = mlp_residual(x.reshape(B * L, C), params['norm2_g'], params['norm2_b'],
                     params['fc1_w'].astype(jnp.bfloat16), params['fc1_b'],
                     params['fc2_w'].astype(jnp.bfloat16), params['fc2_b'])
    return x.reshape(B, L, C)


# --------------------------------------------------------------------------
# Demo
# --------------------------------------------------------------------------

if __name__ == "__main__":
    B, H, W = 2, 16, 16
    dim = 8
    num_heads = 2
    window_size = 8          # power of two so window_area divides 128*128 tokens
    n_hashes = 3
    mlp_ratio = 2.0
    hidden = int(dim * mlp_ratio)

    key = jax.random.PRNGKey(0)
    k_x, k_rot, *k_p = jax.random.split(key, 12)
    x = jax.random.normal(k_x, (B, H * W, dim), dtype=jnp.float32)

    def init(k, shape, scale=0.1):
        return (scale * jax.random.normal(k, shape)).astype(jnp.float32)

    params = {
        'norm1_g': jnp.ones((dim,), jnp.float32),
        'norm1_b': jnp.zeros((dim,), jnp.float32),
        'qkv_w': init(k_p[0], (dim, 3 * dim)),
        'qkv_b': init(k_p[1], (3 * dim,), 0.02),
        'proj_w': init(k_p[2], (dim, dim)),
        'proj_b': init(k_p[3], (dim,), 0.02),
        'norm2_g': jnp.ones((dim,), jnp.float32),
        'norm2_b': jnp.zeros((dim,), jnp.float32),
        'fc1_w': init(k_p[4], (dim, hidden)),
        'fc1_b': init(k_p[5], (hidden,), 0.02),
        'fc2_w': init(k_p[6], (hidden, dim)),
        'fc2_b': init(k_p[7], (dim,), 0.02),
    }

    out = nonlocal_transformer_block(
        x, (H, W), params, dim=dim, num_heads=num_heads,
        window_size=window_size, n_hashes=n_hashes, rot_key=k_rot)
    out = jax.block_until_ready(out)
    assert out.shape == (B, H * W, dim) and out.dtype == jnp.float32
    print("KERNEL_OK")
</pallas_src>

<mosaic_0001>
module attributes {stable_mosaic.version = 11 : i64} {
  func.func @_layernorm_kernel(%arg0: i32, %arg1: memref<512x8xf32, #tpu.memory_space<vmem>>, %arg2: memref<1x8xf32, #tpu.memory_space<vmem>>, %arg3: memref<1x8xf32, #tpu.memory_space<vmem>>, %arg4: memref<512x8xbf16, #tpu.memory_space<vmem>>) attributes {dimension_semantics = [#tpu.dimension_semantics<parallel>], iteration_bounds = array<i64: 1>, scalar_prefetch = 0 : i64, scratch_operands = 0 : i64, tpu.core_type = #tpu.core_type<tc>, window_params = [{transform_indices = @transform_0, window_bounds = array<i64: 512, 8>}, {pipeline_mode = #tpu.pipeline_mode<synchronous>, transform_indices = @transform_1, window_bounds = array<i64: 1, 8>}, {pipeline_mode = #tpu.pipeline_mode<synchronous>, transform_indices = @transform_2, window_bounds = array<i64: 1, 8>}, {transform_indices = @transform_3, window_bounds = array<i64: 512, 8>}]} {
    %c0 = arith.constant 0 : index
    %c0_0 = arith.constant 0 : index
    %0 = vector.load %arg1[%c0, %c0_0] : memref<512x8xf32, #tpu.memory_space<vmem>>, vector<512x8xf32>
    %cst = arith.constant dense<0.000000e+00> : vector<512xf32>
    %1 = vector.multi_reduction <add>, %0, %cst [1] : vector<512x8xf32> to vector<512xf32>
    %2 = vector.shape_cast %1 : vector<512xf32> to vector<512x1xf32>
    %cst_1 = arith.constant 8.000000e+00 : f32
    %3 = vector.broadcast %cst_1 : f32 to vector<512x1xf32>
    %4 = arith.divf %2, %3 : vector<512x1xf32>
    %5 = vector.broadcast %4 : vector<512x1xf32> to vector<512x8xf32>
    %6 = arith.subf %0, %5 : vector<512x8xf32>
    %7 = arith.mulf %6, %6 : vector<512x8xf32>
    %cst_2 = arith.constant dense<0.000000e+00> : vector<512xf32>
    %8 = vector.multi_reduction <add>, %7, %cst_2 [1] : vector<512x8xf32> to vector<512xf32>
    %9 = vector.shape_cast %8 : vector<512xf32> to vector<512x1xf32>
    %cst_3 = arith.constant 8.000000e+00 : f32
    %10 = vector.broadcast %cst_3 : f32 to vector<512x1xf32>
    %11 = arith.divf %9, %10 : vector<512x1xf32>
    %12 = vector.broadcast %4 : vector<512x1xf32> to vector<512x8xf32>
    %13 = arith.subf %0, %12 : vector<512x8xf32>
    %cst_4 = arith.constant 9.99999974E-6 : f32
    %14 = vector.broadcast %cst_4 : f32 to vector<512x1xf32>
    %15 = arith.addf %11, %14 : vector<512x1xf32>
    %16 = math.rsqrt %15 : vector<512x1xf32>
    %17 = vector.broadcast %16 : vector<512x1xf32> to vector<512x8xf32>
    %18 = arith.mulf %13, %17 : vector<512x8xf32>
    %c0_5 = arith.constant 0 : index
    %c0_6 = arith.constant 0 : index
    %19 = vector.load %arg2[%c0_5, %c0_6] : memref<1x8xf32, #tpu.memory_space<vmem>>, vector<1x8xf32>
    %20 = vector.broadcast %19 : vector<1x8xf32> to vector<512x8xf32>
    %21 = arith.mulf %18, %20 : vector<512x8xf32>
    %c0_7 = arith.constant 0 : index
    %c0_8 = arith.constant 0 : index
    %22 = vector.load %arg3[%c0_7, %c0_8] : memref<1x8xf32, #tpu.memory_space<vmem>>, vector<1x8xf32>
    %23 = vector.broadcast %22 : vector<1x8xf32> to vector<512x8xf32>
    %24 = arith.addf %21, %23 : vector<512x8xf32>
    %25 = arith.truncf %24 : vector<512x8xf32> to vector<512x8xbf16>
    %c0_9 = arith.constant 0 : index
    %c0_10 = arith.constant 0 : index
    %26 = vector.load %arg4[%c0_9, %c0_10] : memref<512x8xbf16, #tpu.memory_space<vmem>>, vector<512x8xbf16>
    tpu.vector_store %arg4[%c0_9, %c0_10], %25 {strides = array<i32>} : memref<512x8xbf16, #tpu.memory_space<vmem>>, vector<512x8xbf16>,
    return
  }
  func.func @transform_0(%arg0: i32) -> (i32, i32) {
    %c0_i32 = arith.constant 0 : i32
    %c0_i32_0 = arith.constant 0 : i32
    return %arg0, %c0_i32 : i32, i32
  }
  func.func @transform_1(%arg0: i32) -> (i32, i32) {
    %c0_i32 = arith.constant 0 : i32
    %c0_i32_0 = arith.constant 0 : i32
    %c0_i32_1 = arith.constant 0 : i32
    return %c0_i32, %c0_i32_0 : i32, i32
  }
  func.func @transform_2(%arg0: i32) -> (i32, i32) {
    %c0_i32 = arith.constant 0 : i32
    %c0_i32_0 = arith.constant 0 : i32
    %c0_i32_1 = arith.constant 0 : i32
    return %c0_i32, %c0_i32_0 : i32, i32
  }
  func.func @transform_3(%arg0: i32) -> (i32, i32) {
    %c0_i32 = arith.constant 0 : i32
    %c0_i32_0 = arith.constant 0 : i32
    return %arg0, %c0_i32 : i32, i32
  }
}

</mosaic_0001>

<bundles_post_ra>
// kernel: tpu_custom_call.1
= control target key start
LH: loop header
LB: loop body
LE: loop exit
PB: predicated region body
PF: predicated region fallthrough
CT: control target
= control target key end

     0   :  { %vm78_vm0 = vcmask 64512   ;;  %vm1310_vm1 = vcmask 60416   ;;  %s2959_s0 = inlined_call_operand.vmem [shape: f32[512,8], index: 0, kind: input, shape index: {}]   ;;  %s2960_s1 = inlined_call_operand.vmem [shape: f32[1,8], index: 1, kind: input, shape index: {}]   ;;  %s2961_s2 = inlined_call_operand.vmem [shape: f32[1,8], index: 2, kind: input, shape index: {}]   ;;  %s2962_s3 = inlined_call_operand.vmem [shape: bf16[512,8], index: 3, kind: output, shape index: {}]  }
   0x1   :  { %v1662_v0 = vld [vmem:[%s2959_s0] sm:$0xff]  ;;  %v1667_v1 = vld [vmem:[%s2959_s0 + $0x10] sm:$0xff]  ;;  %v1672_v2 = vld [vmem:[%s2959_s0 + $0x8] sm:$0xff] }
   0x2   :  { %v79_v3 = vsel %vm78_vm0, %v1662_v0, 0.0  ;;  %v85_v4 = vsel %vm78_vm0, %v1667_v1, 0.0  ;;  %v1681_v5 = vld [vmem:[%s2959_s0 + $0x18] sm:$0xff]  ;;  %v82_v6 = vsel %vm78_vm0, %v1672_v2, 0.0  ;;  %v1690_v8 = vld [vmem:[%s2959_s0 + $0x20] sm:$0xff]  ;;  %v1695_v9 = vld [vmem:[%s2959_s0 + $0x28] sm:$0xff] }
   0x3   :  { %80 = vadd.xlane.f32.xlu0 %v79_v3  ;;  %86 = vadd.xlane.f32.xlu1 %v85_v4  ;;  %v88_v7 = vsel %vm78_vm0, %v1681_v5, 0.0  ;;  %v91_v10 = vsel %vm78_vm0, %v1690_v8, 0.0  ;;  %v94_v11 = vsel %vm78_vm0, %v1695_v9, 0.0  ;;  %v1704_v12 = vld [vmem:[%s2959_s0 + $0x30] sm:$0xff]  ;;  %v1709_v13 = vld [vmem:[%s2959_s0 + $0x38] sm:$0xff]  ;;  %v1718_v16 = vld [vmem:[%s2959_s0 + $0x40] sm:$0xff] }
   0x4   :  { %v97_v14 = vsel %vm78_vm0, %v1704_v12, 0.0  ;;  %v100_v15 = vsel %vm78_vm0, %v1709_v13, 0.0  ;;  %v1723_v17 = vld [vmem:[%s2959_s0 + $0x48] sm:$0xff]  ;;  %v103_v18 = vsel %vm78_vm0, %v1718_v16, 0.0  ;;  %v1732_v20 = vld [vmem:[%s2959_s0 + $0x50] sm:$0xff]  ;;  %v1737_v21 = vld [vmem:[%s2959_s0 + $0x58] sm:$0xff] }
   0x5   :  { %v106_v19 = vsel %vm78_vm0, %v1723_v17, 0.0  ;;  %v109_v22 = vsel %vm78_vm0, %v1732_v20, 0.0  ;;  %v112_v23 = vsel %vm78_vm0, %v1737_v21, 0.0  ;;  %v1746_v24 = vld [vmem:[%s2959_s0 + $0x60] sm:$0xff]  ;;  %v1751_v25 = vld [vmem:[%s2959_s0 + $0x68] sm:$0xff]  ;;  %v1760_v28 = vld [vmem:[%s2959_s0 + $0x70] sm:$0xff] }
   0x6   :  { %v115_v26 = vsel %vm78_vm0, %v1746_v24, 0.0  ;;  %v118_v27 = vsel %vm78_vm0, %v1751_v25, 0.0  ;;  %v1765_v29 = vld [vmem:[%s2959_s0 + $0x78] sm:$0xff]  ;;  %v121_v30 = vsel %vm78_vm0, %v1760_v28, 0.0  ;;  %v1774_v32 = vld [vmem:[%s2959_s0 + $0x80] sm:$0xff]  ;;  %v1779_v33 = vld [vmem:[%s2959_s0 + $0x88] sm:$0xff] }
   0x7   :  { %83 = vadd.xlane.f32.xlu0 %v82_v6  ;;  %89 = vadd.xlane.f32.xlu1 %v88_v7  ;;  %v124_v31 = vsel %vm78_vm0, %v1765_v29, 0.0  ;;  %v127_v34 = vsel %vm78_vm0, %v1774_v32, 0.0  ;;  %v130_v35 = vsel %vm78_vm0, %v1779_v33, 0.0  ;;  %v1788_v36 = vld [vmem:[%s2959_s0 + $0x90] sm:$0xff]  ;;  %v1793_v37 = vld [vmem:[%s2959_s0 + $0x98] sm:$0xff]  ;;  %v1802_v40 = vld [vmem:[%s2959_s0 + $0xa0] sm:$0xff] }
   0x8   :  { %v133_v38 = vsel %vm78_vm0, %v1788_v36, 0.0  ;;  %v136_v39 = vsel %vm78_vm0, %v1793_v37, 0.0  ;;  %v1807_v41 = vld [vmem:[%s2959_s0 + $0xa8] sm:$0xff]  ;;  %v139_v42 = vsel %vm78_vm0, %v1802_v40, 0.0  ;;  %v1816_v44 = vld [vmem:[%s2959_s0 + $0xb0] sm:$0xff]  ;;  %v1821_v45 = vld [vmem:[%s2959_s0 + $0xb8] sm:$0xff] }
   0x9   :  { %v142_v43 = vsel %vm78_vm0, %v1807_v41, 0.0  ;;  %v145_v46 = vsel %vm78_vm0, %v1816_v44, 0.0  ;;  %v148_v47 = vsel %vm78_vm0, %v1821_v45, 0.0  ;;  %v1830_v48 = vld [vmem:[%s2959_s0 + $0xc0] sm:$0xff]  ;;  %v1835_v49 = vld [vmem:[%s2959_s0 + $0xc8] sm:$0xff]  ;;  %v1844_v52 = vld [vmem:[%s2959_s0 + $0xd0] sm:$0xff] }
   0xa   :  { %v151_v50 = vsel %vm78_vm0, %v1830_v48, 0.0  ;;  %v154_v51 = vsel %vm78_vm0, %v1835_v49, 0.0  ;;  %v1849_v53 = vld [vmem:[%s2959_s0 + $0xd8] sm:$0xff]  ;;  %v157_v54 = vsel %vm78_vm0, %v1844_v52, 0.0  ;;  %v1858_v56 = vld [vmem:[%s2959_s0 + $0xe0] sm:$0xff]  ;;  %v1863_v57 = vld [vmem:[%s2959_s0 + $0xe8] sm:$0xff] }
   0xb   :  { %92 = vadd.xlane.f32.xlu0 %v91_v10  ;;  %95 = vadd.xlane.f32.xlu1 %v94_v11  ;;  %v160_v55 = vsel %vm78_vm0, %v1849_v53, 0.0  ;;  %v163_v58 = vsel %vm78_vm0, %v1858_v56, 0.0  ;;  %v166_v59 = vsel %vm78_vm0, %v1863_v57, 0.0  ;;  %v1872_v60 = vld [vmem:[%s2959_s0 + $0xf0] sm:$0xff]  ;;  %v1877_v61 = vld [vmem:[%s2959_s0 + $0xf8] sm:$0xff]  ;;  %v1886_v3 = vld [vmem:[%s2959_s0 + $0x100] sm:$0xff] }
   0xc   :  { %v169_v62 = vsel %vm78_vm0, %v1872_v60, 0.0  ;;  %v172_v63 = vsel %vm78_vm0, %v1877_v61, 0.0  ;;  %v1891_v4 = vld [vmem:[%s2959_s0 + $0x108] sm:$0xff]  ;;  %v175_v6 = vsel %vm78_vm0, %v1886_v3, 0.0  ;;  %v1900_v10 = vld [vmem:[%s2959_s0 + $0x110] sm:$0xff]  ;;  %v1905_v11 = vld [vmem:[%s2959_s0 + $0x118] sm:$0xff] }
   0xd   :  { %v178_v7 = vsel %vm78_vm0, %v1891_v4, 0.0 }
   0xf   :  { %98 = vadd.xlane.f32.xlu0 %v97_v14  ;;  %101 = vadd.xlane.f32.xlu1 %v100_v15  ;;  %v181_v14 = vsel %vm78_vm0, %v1900_v10, 0.0  ;;  %v184_v15 = vsel %vm78_vm0, %v1905_v11, 0.0 }
  0x13   :  { %104 = vadd.xlane.f32.xlu0 %v103_v18  ;;  %107 = vadd.xlane.f32.xlu1 %v106_v19  ;;  %v1914_v18 = vld [vmem:[%s2959_s0 + $0x120] sm:$0xff]  ;;  %v1919_v19 = vld [vmem:[%s2959_s0 + $0x128] sm:$0xff] }
  0x17   :  { %110 = vadd.xlane.f32.xlu0 %v109_v22  ;;  %113 = vadd.xlane.f32.xlu1 %v112_v23  ;;  %v187_v22 = vsel %vm78_vm0, %v1914_v18, 0.0  ;;  %v190_v23 = vsel %vm78_vm0, %v1919_v19, 0.0 }
  0x1b   :  { %116 = vadd.xlane.f32.xlu0 %v115_v26  ;;  %119 = vadd.xlane.f32.xlu1 %v118_v27  ;;  %v1928_v26 = vld [vmem:[%s2959_s0 + $0x130] sm:$0xff]  ;;  %v1933_v27 = vld [vmem:[%s2959_s0 + $0x138] sm:$0xff] }
  0x1f   :  { %122 = vadd.xlane.f32.xlu0 %v121_v30  ;;  %125 = vadd.xlane.f32.xlu1 %v124_v31  ;;  %v193_v30 = vsel %vm78_vm0, %v1928_v26, 0.0  ;;  %v196_v31 = vsel %vm78_vm0, %v1933_v27, 0.0 }
  0x23   :  { %128 = vadd.xlane.f32.xlu0 %v127_v34  ;;  %131 = vadd.xlane.f32.xlu1 %v130_v35  ;;  %v1942_v34 = vld [vmem:[%s2959_s0 + $0x140] sm:$0xff]  ;;  %v1947_v35 = vld [vmem:[%s2959_s0 + $0x148] sm:$0xff] }
  0x27   :  { %134 = vadd.xlane.f32.xlu0 %v133_v38  ;;  %137 = vadd.xlane.f32.xlu1 %v136_v39  ;;  %v199_v38 = vsel %vm78_vm0, %v1942_v34, 0.0  ;;  %v202_v39 = vsel %vm78_vm0, %v1947_v35, 0.0 }
  0x2b   :  { %140 = vadd.xlane.f32.xlu0 %v139_v42  ;;  %143 = vadd.xlane.f32.xlu1 %v142_v43  ;;  %v1956_v42 = vld [vmem:[%s2959_s0 + $0x150] sm:$0xff]  ;;  %v1961_v43 = vld [vmem:[%s2959_s0 + $0x158] sm:$0xff] }
  0x2f   :  { %146 = vadd.xlane.f32.xlu0 %v145_v46  ;;  %149 = vadd.xlane.f32.xlu1 %v148_v47  ;;  %v205_v46 = vsel %vm78_vm0, %v1956_v42, 0.0  ;;  %v208_v47 = vsel %vm78_vm0, %v1961_v43, 0.0 }
  0x33   :  { %152 = vadd.xlane.f32.xlu0 %v151_v50  ;;  %155 = vadd.xlane.f32.xlu1 %v154_v51  ;;  %v1970_v50 = vld [vmem:[%s2959_s0 + $0x160] sm:$0xff]  ;;  %v1975_v51 = vld [vmem:[%s2959_s0 + $0x168] sm:$0xff] }
  0x37   :  { %158 = vadd.xlane.f32.xlu0 %v157_v54  ;;  %161 = vadd.xlane.f32.xlu1 %v160_v55  ;;  %v211_v54 = vsel %vm78_vm0, %v1970_v50, 0.0  ;;  %v214_v55 = vsel %vm78_vm0, %v1975_v51, 0.0 }
  0x3b   :  { %164 = vadd.xlane.f32.xlu0 %v163_v58  ;;  %167 = vadd.xlane.f32.xlu1 %v166_v59  ;;  %v1984_v58 = vld [vmem:[%s2959_s0 + $0x170] sm:$0xff]  ;;  %v1989_v59 = vld [vmem:[%s2959_s0 + $0x178] sm:$0xff] }
  0x3f   :  { %170 = vadd.xlane.f32.xlu0 %v169_v62  ;;  %173 = vadd.xlane.f32.xlu1 %v172_v63  ;;  %v217_v62 = vsel %vm78_vm0, %v1984_v58, 0.0  ;;  %v220_v63 = vsel %vm78_vm0, %v1989_v59, 0.0 }
  0x43   :  { %176 = vadd.xlane.f32.xlu0 %v175_v6  ;;  %179 = vadd.xlane.f32.xlu1 %v178_v7  ;;  %v1998_v6 = vld [vmem:[%s2959_s0 + $0x180] sm:$0xff]  ;;  %v2003_v7 = vld [vmem:[%s2959_s0 + $0x188] sm:$0xff] }
  0x47   :  { %182 = vadd.xlane.f32.xlu0 %v181_v14  ;;  %185 = vadd.xlane.f32.xlu1 %v184_v15  ;;  %v223_v14 = vsel %vm78_vm0, %v1998_v6, 0.0  ;;  %v226_v15 = vsel %vm78_vm0, %v2003_v7, 0.0 }
  0x4b   :  { %188 = vadd.xlane.f32.xlu0 %v187_v22  ;;  %191 = vadd.xlane.f32.xlu1 %v190_v23  ;;  %v2012_v22 = vld [vmem:[%s2959_s0 + $0x190] sm:$0xff]  ;;  %v2017_v23 = vld [vmem:[%s2959_s0 + $0x198] sm:$0xff] }
  0x4c   :  { %2997 = vst [vmem:[#allocation2_spill] sm:$0xff] %v2012_v22  ;;  %2998 = vst [vmem:[#allocation3_spill] sm:$0xff] %v2017_v23 }
  0x4f   :  { %194 = vadd.xlane.f32.xlu0 %v193_v30  ;;  %197 = vadd.xlane.f32.xlu1 %v196_v31  ;;  %v229_v30 = vsel %vm78_vm0, %v2012_v22, 0.0  ;;  %v232_v31 = vsel %vm78_vm0, %v2017_v23, 0.0 }
  0x53   :  { %200 = vadd.xlane.f32.xlu0 %v199_v38  ;;  %203 = vadd.xlane.f32.xlu1 %v202_v39  ;;  %v2026_v38 = vld [vmem:[%s2959_s0 + $0x1a0] sm:$0xff]  ;;  %v2031_v39 = vld [vmem:[%s2959_s0 + $0x1a8] sm:$0xff] }
  0x54   :  { %2999 = vst [vmem:[#allocation4_spill] sm:$0xff] %v2026_v38  ;;  %3000 = vst [vmem:[#allocation5_spill] sm:$0xff] %v2031_v39 }
  0x57   :  { %206 = vadd.xlane.f32.xlu0 %v205_v46  ;;  %209 = vadd.xlane.f32.xlu1 %v208_v47  ;;  %v235_v46 = vsel %vm78_vm0, %v2026_v38, 0.0  ;;  %v238_v47 = vsel %vm78_vm0, %v2031_v39, 0.0 }
  0x5b   :  { %212 = vadd.xlane.f32.xlu0 %v211_v54  ;;  %215 = vadd.xlane.f32.xlu1 %v214_v55  ;;  %v2040_v54 = vld [vmem:[%s2959_s0 + $0x1b0] sm:$0xff]  ;;  %v2045_v55 = vld [vmem:[%s2959_s0 + $0x1b8] sm:$0xff] }
  0x5c   :  { %3001 = vst [vmem:[#allocation6_spill] sm:$0xff] %v2040_v54  ;;  %3002 = vst [vmem:[#allocation7_spill] sm:$0xff] %v2045_v55 }
  0x5f   :  { %218 = vadd.xlane.f32.xlu0 %v217_v62  ;;  %221 = vadd.xlane.f32.xlu1 %v220_v63  ;;  %v241_v62 = vsel %vm78_vm0, %v2040_v54, 0.0  ;;  %v244_v63 = vsel %vm78_vm0, %v2045_v55, 0.0 }
  0x63   :  { %224 = vadd.xlane.f32.xlu0 %v223_v14  ;;  %227 = vadd.xlane.f32.xlu1 %v226_v15  ;;  %v2054_v14 = vld [vmem:[%s2959_s0 + $0x1c0] sm:$0xff]  ;;  %v2059_v15 = vld [vmem:[%s2959_s0 + $0x1c8] sm:$0xff] }
  0x64   :  { %3003 = vst [vmem:[#allocation8_spill] sm:$0xff] %v2054_v14  ;;  %3004 = vst [vmem:[#allocation9_spill] sm:$0xff] %v2059_v15 }
  0x67   :  { %230 = vadd.xlane.f32.xlu0 %v229_v30  ;;  %233 = vadd.xlane.f32.xlu1 %v232_v31  ;;  %v247_v30 = vsel %vm78_vm0, %v2054_v14, 0.0  ;;  %v250_v31 = vsel %vm78_vm0, %v2059_v15, 0.0  ;;  %v2082_v15 = vld [vmem:[%s2959_s0 + $0x1e0] sm:$0xff]  ;;  %v2087_v14 = vld [vmem:[%s2959_s0 + $0x1e8] sm:$0xff] }
  0x68   :  { %3007 = vst [vmem:[#allocation12_spill] sm:$0xff] %v2082_v15  ;;  %3008 = vst [vmem:[#allocation13_spill] sm:$0xff] %v2087_v14 }
  0x6b   :  { %236 = vadd.xlane.f32.xlu0 %v235_v46  ;;  %239 = vadd.xlane.f32.xlu1 %v238_v47  ;;  %v2068_v46 = vld [vmem:[%s2959_s0 + $0x1d0] sm:$0xff]  ;;  %v2073_v47 = vld [vmem:[%s2959_s0 + $0x1d8] sm:$0xff] }
  0x6c   :  { %3005 = vst [vmem:[#allocation10_spill] sm:$0xff] %v2068_v46  ;;  %3006 = vst [vmem:[#allocation11_spill] sm:$0xff] %v2073_v47 }
  0x6f   :  { %242 = vadd.xlane.f32.xlu0 %v241_v62  ;;  %245 = vadd.xlane.f32.xlu1 %v244_v63  ;;  %v253_v62 = vsel %vm78_vm0, %v2068_v46, 0.0  ;;  %v256_v63 = vsel %vm78_vm0, %v2073_v47, 0.0  ;;  %v2096_v47 = vld [vmem:[%s2959_s0 + $0x1f0] sm:$0xff]  ;;  %v2101_v46 = vld [vmem:[%s2959_s0 + $0x1f8] sm:$0xff] }
  0x70   :  { %3009 = vst [vmem:[#allocation14_spill] sm:$0xff] %v2096_v47 }
  0x73   :  { %248 = vadd.xlane.f32.xlu0 %v247_v30  ;;  %251 = vadd.xlane.f32.xlu1 %v250_v31  ;;  %v259_v30 = vsel %vm78_vm0, %v2082_v15, 0.0  ;;  %v262_v31 = vsel %vm78_vm0, %v2087_v14, 0.0 }
  0x77   :  { %254 = vadd.xlane.f32.xlu0 %v253_v62  ;;  %257 = vadd.xlane.f32.xlu1 %v256_v63  ;;  %v265_v62 = vsel %vm78_vm0, %v2096_v47, 0.0  ;;  %v268_v63 = vsel %vm78_vm0, %v2101_v46, 0.0 }
  0x7b   :  { %260 = vadd.xlane.f32.xlu0 %v259_v30  ;;  %263 = vadd.xlane.f32.xlu1 %v262_v31 }
  0x7f   :  { %266 = vadd.xlane.f32.xlu0 %v265_v62  ;;  %269 = vadd.xlane.f32.xlu1 %v268_v63 }
  0x90   :  { %v81_v14 = vpop.xlane.xlu0 %80  ;;  %v87_v15 = vpop.xlane.xlu1 %86 }
  0x91   :  { %v272_v55 = vmul.f32 0.125, %v81_v14  ;;  %v274_v54 = vmul.f32 0.125, %v87_v15 }
  0x93   :  { %v2108_v39 = vsub.f32 %v1662_v0, %v272_v55  ;;  %v2111_v38 = vsub.f32 %v1667_v1, %v274_v54 }
  0x94   :  { %v84_v30 = vpop.xlane.xlu0 %83  ;;  %v90_v31 = vpop.xlane.xlu1 %89 }
  0x95   :  { %3010 = vst [vmem:[#allocation15_spill] sm:$0xff] %v2111_v38  ;;  %v273_v23 = vmul.f32 0.125, %v84_v30  ;;  %v275_v22 = vmul.f32 0.125, %v90_v31  ;;  %v400_v47 = vmul.f32 %v2108_v39, %v2108_v39  ;;  %v402_v62 = vmul.f32 %v2111_v38, %v2111_v38 }
  0x97   :  { %v2118_v63 = vsub.f32 %v1672_v2, %v273_v23  ;;  %v2121_v14 = vsub.f32 %v1681_v5, %v275_v22  ;;  %v464_v0 = vsel %vm78_vm0, %v400_v47, 0.0  ;;  %v470_v55 = vsel %vm78_vm0, %v402_v62, 0.0 }
  0x98   :  { %465 = vadd.xlane.f32.xlu0 %v464_v0  ;;  %v93_v1 = vpop.xlane.xlu0 %92  ;;  %v96_v54 = vpop.xlane.xlu1 %95 }
  0x99   :  { %v276_v15 = vmul.f32 0.125, %v93_v1  ;;  %v277_v30 = vmul.f32 0.125, %v96_v54  ;;  %v401_v31 = vmul.f32 %v2118_v63, %v2118_v63  ;;  %v403_v38 = vmul.f32 %v2121_v14, %v2121_v14 }
  0x9b   :  { %v2130_v2 = vsub.f32 %v1690_v8, %v276_v15  ;;  %v2133_v5 = vsub.f32 %v1695_v9, %v277_v30  ;;  %v467_v22 = vsel %vm78_vm0, %v401_v31, 0.0  ;;  %v473_v62 = vsel %vm78_vm0, %v403_v38, 0.0 }
  0x9c   :  { %471 = vadd.xlane.f32.xlu0 %v470_v55  ;;  %468 = vadd.xlane.f32.xlu1 %v467_v22  ;;  %v99_v23 = vpop.xlane.xlu0 %98  ;;  %v102_v47 = vpop.xlane.xlu1 %101 }
  0x9d   :  { %v278_v0 = vmul.f32 0.125, %v99_v23  ;;  %v279_v1 = vmul.f32 0.125, %v102_v47  ;;  %v404_v54 = vmul.f32 %v2130_v2, %v2130_v2  ;;  %v405_v8 = vmul.f32 %v2133_v5, %v2133_v5 }
  0x9f   :  { %v2142_v15 = vsub.f32 %v1704_v12, %v278_v0  ;;  %v2145_v9 = vsub.f32 %v1709_v13, %v279_v1  ;;  %v476_v55 = vsel %vm78_vm0, %v404_v54, 0.0  ;;  %v479_v31 = vsel %vm78_vm0, %v405_v8, 0.0 }
  0xa0   :  { %474 = vadd.xlane.f32.xlu1 %v473_v62  ;;  %477 = vadd.xlane.f32.xlu0 %v476_v55  ;;  %v105_v30 = vpop.xlane.xlu0 %104  ;;  %v108_v38 = vpop.xlane.xlu1 %107 }
  0xa1   :  { %v280_v22 = vmul.f32 0.125, %v105_v30  ;;  %v281_v23 = vmul.f32 0.125, %v108_v38  ;;  %v406_v47 = vmul.f32 %v2142_v15, %v2142_v15  ;;  %v407_v12 = vmul.f32 %v2145_v9, %v2145_v9 }
  0xa3   :  { %v2154_v0 = vsub.f32 %v1718_v16, %v280_v22  ;;  %v2157_v13 = vsub.f32 %v1723_v17, %v281_v23  ;;  %v482_v62 = vsel %vm78_vm0, %v406_v47, 0.0  ;;  %v485_v8 = vsel %vm78_vm0, %v407_v12, 0.0 }
  0xa4   :  { %480 = vadd.xlane.f32.xlu1 %v479_v31  ;;  %483 = vadd.xlane.f32.xlu0 %v482_v62  ;;  %v111_v1 = vpop.xlane.xlu0 %110  ;;  %v114_v54 = vpop.xlane.xlu1 %113 }
  0xa5   :  { %v282_v55 = vmul.f32 0.125, %v111_v1  ;;  %v283_v30 = vmul.f32 0.125, %v114_v54  ;;  %v408_v38 = vmul.f32 %v2154_v0, %v2154_v0  ;;  %v409_v16 = vmul.f32 %v2157_v13, %v2157_v13 }
  0xa7   :  { %v2166_v22 = vsub.f32 %v1732_v20, %v282_v55  ;;  %v2169_v17 = vsub.f32 %v1737_v21, %v283_v30  ;;  %v488_v31 = vsel %vm78_vm0, %v408_v38, 0.0  ;;  %v491_v12 = vsel %vm78_vm0, %v409_v16, 0.0 }
  0xa8   :  { %486 = vadd.xlane.f32.xlu1 %v485_v8  ;;  %489 = vadd.xlane.f32.xlu0 %v488_v31  ;;  %v117_v23 = vpop.xlane.xlu0 %116  ;;  %v120_v47 = vpop.xlane.xlu1 %119 }
  0xa9   :  { %v284_v62 = vmul.f32 0.125, %v117_v23  ;;  %v285_v1 = vmul.f32 0.125, %v120_v47  ;;  %v410_v54 = vmul.f32 %v2166_v22, %v2166_v22  ;;  %v411_v20 = vmul.f32 %v2169_v17, %v2169_v17 }
  0xab   :  { %v2178_v55 = vsub.f32 %v1746_v24, %v284_v62  ;;  %v2181_v21 = vsub.f32 %v1751_v25, %v285_v1  ;;  %v494_v8 = vsel %vm78_vm0, %v410_v54, 0.0  ;;  %v497_v16 = vsel %vm78_vm0, %v411_v20, 0.0 }
  0xac   :  { %492 = vadd.xlane.f32.xlu1 %v491_v12  ;;  %495 = vadd.xlane.f32.xlu0 %v494_v8  ;;  %v123_v30 = vpop.xlane.xlu0 %122  ;;  %v126_v38 = vpop.xlane.xlu1 %125 }
  0xad   :  { %v286_v31 = vmul.f32 0.125, %v123_v30  ;;  %v287_v23 = vmul.f32 0.125, %v126_v38  ;;  %v412_v47 = vmul.f32 %v2178_v55, %v2178_v55  ;;  %v413_v24 = vmul.f32 %v2181_v21, %v2181_v21 }
  0xaf   :  { %v2190_v62 = vsub.f32 %v1760_v28, %v286_v31  ;;  %v2193_v25 = vsub.f32 %v1765_v29, %v287_v23  ;;  %v500_v12 = vsel %vm78_vm0, %v412_v47, 0.0  ;;  %v503_v20 = vsel %vm78_vm0, %v413_v24, 0.0 }
  0xb0   :  { %498 = vadd.xlane.f32.xlu1 %v497_v16  ;;  %501 = vadd.xlane.f32.xlu0 %v500_v12  ;;  %v129_v1 = vpop.xlane.xlu0 %128  ;;  %v132_v54 = vpop.xlane.xlu1 %131 }
  0xb1   :  { %v288_v8 = vmul.f32 0.125, %v129_v1  ;;  %v289_v30 = vmul.f32 0.125, %v132_v54  ;;  %v414_v38 = vmul.f32 %v2190_v62, %v2190_v62  ;;  %v415_v28 = vmul.f32 %v2193_v25, %v2193_v25 }
  0xb3   :  { %v2202_v31 = vsub.f32 %v1774_v32, %v288_v8  ;;  %v2205_v29 = vsub.f32 %v1779_v33, %v289_v30  ;;  %v506_v16 = vsel %vm78_vm0, %v414_v38, 0.0  ;;  %v509_v24 = vsel %vm78_vm0, %v415_v28, 0.0 }
  0xb4   :  { %504 = vadd.xlane.f32.xlu1 %v503_v20  ;;  %507 = vadd.xlane.f32.xlu0 %v506_v16  ;;  %v135_v23 = vpop.xlane.xlu0 %134  ;;  %v138_v47 = vpop.xlane.xlu1 %137 }
  0xb5   :  { %v290_v12 = vmul.f32 0.125, %v135_v23  ;;  %v291_v1 = vmul.f32 0.125, %v138_v47  ;;  %v416_v54 = vmul.f32 %v2202_v31, %v2202_v31  ;;  %v417_v32 = vmul.f32 %v2205_v29, %v2205_v29 }
  0xb7   :  { %v2214_v8 = vsub.f32 %v1788_v36, %v290_v12  ;;  %v2217_v33 = vsub.f32 %v1793_v37, %v291_v1  ;;  %v512_v20 = vsel %vm78_vm0, %v416_v54, 0.0  ;;  %v515_v28 = vsel %vm78_vm0, %v417_v32, 0.0 }
  0xb8   :  { %510 = vadd.xlane.f32.xlu1 %v509_v24  ;;  %513 = vadd.xlane.f32.xlu0 %v512_v20  ;;  %v141_v30 = vpop.xlane.xlu0 %140  ;;  %v144_v38 = vpop.xlane.xlu1 %143 }
  0xb9   :  { %v292_v16 = vmul.f32 0.125, %v141_v30  ;;  %v293_v23 = vmul.f32 0.125, %v144_v38  ;;  %v418_v47 = vmul.f32 %v2214_v8, %v2214_v8  ;;  %v419_v36 = vmul.f32 %v2217_v33, %v2217_v33 }
  0xbb   :  { %v2226_v12 = vsub.f32 %v1802_v40, %v292_v16  ;;  %v2229_v37 = vsub.f32 %v1807_v41, %v293_v23  ;;  %v518_v24 = vsel %vm78_vm0, %v418_v47, 0.0  ;;  %v521_v32 = vsel %vm78_vm0, %v419_v36, 0.0 }
  0xbc   :  { %516 = vadd.xlane.f32.xlu1 %v515_v28  ;;  %519 = vadd.xlane.f32.xlu0 %v518_v24  ;;  %v147_v1 = vpop.xlane.xlu0 %146  ;;  %v150_v54 = vpop.xlane.xlu1 %149 }
  0xbd   :  { %v294_v20 = vmul.f32 0.125, %v147_v1  ;;  %v295_v30 = vmul.f32 0.125, %v150_v54  ;;  %v420_v38 = vmul.f32 %v2226_v12, %v2226_v12  ;;  %v421_v40 = vmul.f32 %v2229_v37, %v2229_v37 }
  0xbf   :  { %v2238_v16 = vsub.f32 %v1816_v44, %v294_v20  ;;  %v2241_v41 = vsub.f32 %v1821_v45, %v295_v30  ;;  %v524_v28 = vsel %vm78_vm0, %v420_v38, 0.0  ;;  %v527_v36 = vsel %vm78_vm0, %v421_v40, 0.0 }
  0xc0   :  { %522 = vadd.xlane.f32.xlu1 %v521_v32  ;;  %525 = vadd.xlane.f32.xlu0 %v524_v28  ;;  %v153_v23 = vpop.xlane.xlu0 %152  ;;  %v156_v47 = vpop.xlane.xlu1 %155 }
  0xc1   :  { %v296_v24 = vmul.f32 0.125, %v153_v23  ;;  %v297_v1 = vmul.f32 0.125, %v156_v47  ;;  %v422_v54 = vmul.f32 %v2238_v16, %v2238_v16  ;;  %v423_v44 = vmul.f32 %v2241_v41, %v2241_v41 }
  0xc3   :  { %v2250_v20 = vsub.f32 %v1830_v48, %v296_v24  ;;  %v2253_v45 = vsub.f32 %v1835_v49, %v297_v1  ;;  %v530_v32 = vsel %vm78_vm0, %v422_v54, 0.0  ;;  %v533_v40 = vsel %vm78_vm0, %v423_v44, 0.0 }
  0xc4   :  { %528 = vadd.xlane.f32.xlu1 %v527_v36  ;;  %531 = vadd.xlane.f32.xlu0 %v530_v32  ;;  %v159_v30 = vpop.xlane.xlu0 %158  ;;  %v162_v38 = vpop.xlane.xlu1 %161 }
  0xc5   :  { %v298_v28 = vmul.f32 0.125, %v159_v30  ;;  %v299_v23 = vmul.f32 0.125, %v162_v38  ;;  %v424_v47 = vmul.f32 %v2250_v20, %v2250_v20  ;;  %v425_v48 = vmul.f32 %v2253_v45, %v2253_v45 }
  0xc7   :  { %v2262_v24 = vsub.f32 %v1844_v52, %v298_v28  ;;  %v2265_v49 = vsub.f32 %v1849_v53, %v299_v23  ;;  %v536_v36 = vsel %vm78_vm0, %v424_v47, 0.0  ;;  %v539_v44 = vsel %vm78_vm0, %v425_v48, 0.0 }
  0xc8   :  { %534 = vadd.xlane.f32.xlu1 %v533_v40  ;;  %537 = vadd.xlane.f32.xlu0 %v536_v36  ;;  %v165_v1 = vpop.xlane.xlu0 %164  ;;  %v168_v54 = vpop.xlane.xlu1 %167 }
  0xc9   :  { %v300_v32 = vmul.f32 0.125, %v165_v1  ;;  %v301_v30 = vmul.f32 0.125, %v168_v54  ;;  %v426_v38 = vmul.f32 %v2262_v24, %v2262_v24  ;;  %v427_v52 = vmul.f32 %v2265_v49, %v2265_v49 }
  0xcb   :  { %v2274_v28 = vsub.f32 %v1858_v56, %v300_v32  ;;  %v2277_v53 = vsub.f32 %v1863_v57, %v301_v30  ;;  %v542_v40 = vsel %vm78_vm0, %v426_v38, 0.0  ;;  %v545_v48 = vsel %vm78_vm0, %v427_v52, 0.0 }
  0xcc   :  { %540 = vadd.xlane.f32.xlu1 %v539_v44  ;;  %543 = vadd.xlane.f32.xlu0 %v542_v40  ;;  %v171_v23 = vpop.xlane.xlu0 %170  ;;  %v174_v47 = vpop.xlane.xlu1 %173 }
  0xcd   :  { %v302_v36 = vmul.f32 0.125, %v171_v23  ;;  %v303_v1 = vmul.f32 0.125, %v174_v47  ;;  %v428_v54 = vmul.f32 %v2274_v28, %v2274_v28  ;;  %v429_v56 = vmul.f32 %v2277_v53, %v2277_v53 }
  0xcf   :  { %v2286_v32 = vsub.f32 %v1872_v60, %v302_v36  ;;  %v2289_v57 = vsub.f32 %v1877_v61, %v303_v1  ;;  %v548_v44 = vsel %vm78_vm0, %v428_v54, 0.0  ;;  %v551_v52 = vsel %vm78_vm0, %v429_v56, 0.0 }
  0xd0   :  { %546 = vadd.xlane.f32.xlu1 %v545_v48  ;;  %549 = vadd.xlane.f32.xlu0 %v548_v44  ;;  %v177_v30 = vpop.xlane.xlu0 %176  ;;  %v180_v38 = vpop.xlane.xlu1 %179 }
  0xd1   :  { %v304_v40 = vmul.f32 0.125, %v177_v30  ;;  %v305_v23 = vmul.f32 0.125, %v180_v38  ;;  %v430_v47 = vmul.f32 %v2286_v32, %v2286_v32  ;;  %v431_v60 = vmul.f32 %v2289_v57, %v2289_v57 }
  0xd3   :  { %v2298_v36 = vsub.f32 %v1886_v3, %v304_v40  ;;  %v2301_v61 = vsub.f32 %v1891_v4, %v305_v23  ;;  %v554_v48 = vsel %vm78_vm0, %v430_v47, 0.0  ;;  %v557_v56 = vsel %vm78_vm0, %v431_v60, 0.0 }
  0xd4   :  { %552 = vadd.xlane.f32.xlu1 %v551_v52  ;;  %555 = vadd.xlane.f32.xlu0 %v554_v48  ;;  %v183_v1 = vpop.xlane.xlu0 %182  ;;  %v186_v54 = vpop.xlane.xlu1 %185 }
  0xd5   :  { %v306_v44 = vmul.f32 0.125, %v183_v1  ;;  %v307_v30 = vmul.f32 0.125, %v186_v54  ;;  %v432_v38 = vmul.f32 %v2298_v36, %v2298_v36  ;;  %v433_v3 = vmul.f32 %v2301_v61, %v2301_v61 }
  0xd7   :  { %v2310_v40 = vsub.f32 %v1900_v10, %v306_v44  ;;  %v2313_v4 = vsub.f32 %v1905_v11, %v307_v30  ;;  %v560_v52 = vsel %vm78_vm0, %v432_v38, 0.0  ;;  %v563_v60 = vsel %vm78_vm0, %v433_v3, 0.0 }
  0xd8   :  { %558 = vadd.xlane.f32.xlu1 %v557_v56  ;;  %561 = vadd.xlane.f32.xlu0 %v560_v52  ;;  %v189_v23 = vpop.xlane.xlu0 %188  ;;  %v192_v47 = vpop.xlane.xlu1 %191 }
  0xd9   :  { %v308_v48 = vmul.f32 0.125, %v189_v23  ;;  %v309_v1 = vmul.f32 0.125, %v192_v47  ;;  %v434_v54 = vmul.f32 %v2310_v40, %v2310_v40  ;;  %v435_v10 = vmul.f32 %v2313_v4, %v2313_v4 }
  0xdb   :  { %v2322_v44 = vsub.f32 %v1914_v18, %v308_v48  ;;  %v2325_v11 = vsub.f32 %v1919_v19, %v309_v1  ;;  %v566_v56 = vsel %vm78_vm0, %v434_v54, 0.0  ;;  %v569_v3 = vsel %vm78_vm0, %v435_v10, 0.0 }
  0xdc   :  { %564 = vadd.xlane.f32.xlu1 %v563_v60  ;;  %567 = vadd.xlane.f32.xlu0 %v566_v56  ;;  %v195_v30 = vpop.xlane.xlu0 %194  ;;  %v198_v38 = vpop.xlane.xlu1 %197 }
  0xdd   :  { %v310_v52 = vmul.f32 0.125, %v195_v30  ;;  %v311_v23 = vmul.f32 0.125, %v198_v38  ;;  %v436_v47 = vmul.f32 %v2322_v44, %v2322_v44  ;;  %v437_v18 = vmul.f32 %v2325_v11, %v2325_v11 }
  0xdf   :  { %v2334_v48 = vsub.f32 %v1928_v26, %v310_v52  ;;  %v2337_v19 = vsub.f32 %v1933_v27, %v311_v23  ;;  %v572_v60 = vsel %vm78_vm0, %v436_v47, 0.0  ;;  %v575_v10 = vsel %vm78_vm0, %v437_v18, 0.0 }
  0xe0   :  { %570 = vadd.xlane.f32.xlu1 %v569_v3  ;;  %573 = vadd.xlane.f32.xlu0 %v572_v60  ;;  %v201_v1 = vpop.xlane.xlu0 %200  ;;  %v204_v54 = vpop.xlane.xlu1 %203 }
  0xe1   :  { %v312_v56 = vmul.f32 0.125, %v201_v1  ;;  %v313_v30 = vmul.f32 0.125, %v204_v54  ;;  %v438_v38 = vmul.f32 %v2334_v48, %v2334_v48  ;;  %v439_v26 = vmul.f32 %v2337_v19, %v2337_v19 }
  0xe3   :  { %v2346_v52 = vsub.f32 %v1942_v34, %v312_v56  ;;  %v2349_v27 = vsub.f32 %v1947_v35, %v313_v30  ;;  %v578_v3 = vsel %vm78_vm0, %v438_v38, 0.0  ;;  %v581_v18 = vsel %vm78_vm0, %v439_v26, 0.0 }
  0xe4   :  { %576 = vadd.xlane.f32.xlu1 %v575_v10  ;;  %579 = vadd.xlane.f32.xlu0 %v578_v3  ;;  %v207_v23 = vpop.xlane.xlu0 %206  ;;  %v210_v47 = vpop.xlane.xlu1 %209 }
  0xe5   :  { %v314_v60 = vmul.f32 0.125, %v207_v23  ;;  %v315_v1 = vmul.f32 0.125, %v210_v47  ;;  %v440_v54 = vmul.f32 %v2346_v52, %v2346_v52  ;;  %v441_v34 = vmul.f32 %v2349_v27, %v2349_v27 }
  0xe7   :  { %v2358_v56 = vsub.f32 %v1956_v42, %v314_v60  ;;  %v2361_v35 = vsub.f32 %v1961_v43, %v315_v1  ;;  %v584_v10 = vsel %vm78_vm0, %v440_v54, 0.0  ;;  %v587_v26 = vsel %vm78_vm0, %v441_v34, 0.0 }
  0xe8   :  { %582 = vadd.xlane.f32.xlu1 %v581_v18  ;;  %585 = vadd.xlane.f32.xlu0 %v584_v10  ;;  %v213_v30 = vpop.xlane.xlu0 %212  ;;  %v216_v38 = vpop.xlane.xlu1 %215 }
  0xe9   :  { %v316_v3 = vmul.f32 0.125, %v213_v30  ;;  %v317_v23 = vmul.f32 0.125, %v216_v38  ;;  %v442_v47 = vmul.f32 %v2358_v56, %v2358_v56  ;;  %v443_v42 = vmul.f32 %v2361_v35, %v2361_v35 }
  0xeb   :  { %v2370_v60 = vsub.f32 %v1970_v50, %v316_v3  ;;  %v2373_v43 = vsub.f32 %v1975_v51, %v317_v23  ;;  %v590_v18 = vsel %vm78_vm0, %v442_v47, 0.0  ;;  %v593_v34 = vsel %vm78_vm0, %v443_v42, 0.0 }
  0xec   :  { %588 = vadd.xlane.f32.xlu1 %v587_v26  ;;  %591 = vadd.xlane.f32.xlu0 %v590_v18  ;;  %v219_v1 = vpop.xlane.xlu0 %218  ;;  %v222_v54 = vpop.xlane.xlu1 %221 }
  0xed   :  { %3011 = vst [vmem:[#allocation16_spill] sm:$0xff] %v2370_v60  ;;  %3012 = vst [vmem:[#allocation17_spill] sm:$0xff] %v2373_v43  ;;  %v318_v10 = vmul.f32 0.125, %v219_v1  ;;  %v319_v30 = vmul.f32 0.125, %v222_v54  ;;  %v444_v38 = vmul.f32 %v2370_v60, %v2370_v60  ;;  %v445_v50 = vmul.f32 %v2373_v43, %v2373_v43 }
  0xef   :  { %v2382_v3 = vsub.f32 %v1984_v58, %v318_v10  ;;  %v2385_v51 = vsub.f32 %v1989_v59, %v319_v30  ;;  %v596_v26 = vsel %vm78_vm0, %v444_v38, 0.0  ;;  %v599_v42 = vsel %vm78_vm0, %v445_v50, 0.0 }
  0xf0   :  { %594 = vadd.xlane.f32.xlu1 %v593_v34  ;;  %597 = vadd.xlane.f32.xlu0 %v596_v26  ;;  %v225_v23 = vpop.xlane.xlu0 %224  ;;  %v228_v47 = vpop.xlane.xlu1 %227 }
  0xf1   :  { %3013 = vst [vmem:[#allocation18_spill] sm:$0xff] %v2382_v3  ;;  %3014 = vst [vmem:[#allocation19_spill] sm:$0xff] %v2385_v51  ;;  %v320_v18 = vmul.f32 0.125, %v225_v23  ;;  %v321_v1 = vmul.f32 0.125, %v228_v47  ;;  %v446_v54 = vmul.f32 %v2382_v3, %v2382_v3  ;;  %v447_v58 = vmul.f32 %v2385_v51, %v2385_v51 }
  0xf3   :  { %v2394_v10 = vsub.f32 %v1998_v6, %v320_v18  ;;  %v2397_v59 = vsub.f32 %v2003_v7, %v321_v1  ;;  %v602_v34 = vsel %vm78_vm0, %v446_v54, 0.0  ;;  %v605_v50 = vsel %vm78_vm0, %v447_v58, 0.0  ;;  %v3017_v18 = vld [vmem:[#allocation2_spill] sm:$0xff]  ;;  %v3019_v7 = vld [vmem:[#allocation3_spill] sm:$0xff] }
  0xf4   :  { %600 = vadd.xlane.f32.xlu1 %v599_v42  ;;  %603 = vadd.xlane.f32.xlu0 %v602_v34  ;;  %v231_v30 = vpop.xlane.xlu0 %230  ;;  %v234_v38 = vpop.xlane.xlu1 %233 }
  0xf5   :  { %3015 = vst [vmem:[#allocation20_spill] sm:$0xff] %v2394_v10  ;;  %3016 = vst [vmem:[#allocation21_spill] sm:$0xff] %v2397_v59  ;;  %v322_v26 = vmul.f32 0.125, %v231_v30  ;;  %v323_v23 = vmul.f32 0.125, %v234_v38  ;;  %v448_v47 = vmul.f32 %v2394_v10, %v2394_v10  ;;  %v449_v6 = vmul.f32 %v2397_v59, %v2397_v59 }
  0xf7   :  { %v2406_v51 = vsub.f32 %v3017_v18, %v322_v26  ;;  %v2409_v1 = vsub.f32 %v3019_v7, %v323_v23  ;;  %v608_v42 = vsel %vm78_vm0, %v448_v47, 0.0  ;;  %v611_v34 = vsel %vm78_vm0, %v449_v6, 0.0  ;;  %v3021_v18 = vld [vmem:[#allocation4_spill] sm:$0xff]  ;;  %v3023_v23 = vld [vmem:[#allocation5_spill] sm:$0xff] }
  0xf8   :  { %606 = vadd.xlane.f32.xlu1 %v605_v50  ;;  %609 = vadd.xlane.f32.xlu0 %v608_v42  ;;  %v237_v54 = vpop.xlane.xlu0 %236  ;;  %v240_v58 = vpop.xlane.xlu1 %239 }
  0xf9   :  { %3018 = vst [vmem:[#allocation2_spill] sm:$0xff] %v2406_v51  ;;  %3020 = vst [vmem:[#allocation3_spill] sm:$0xff] %v2409_v1  ;;  %v324_v30 = vmul.f32 0.125, %v237_v54  ;;  %v325_v38 = vmul.f32 0.125, %v240_v58  ;;  %v450_v10 = vmul.f32 %v2406_v51, %v2406_v51  ;;  %v451_v26 = vmul.f32 %v2409_v1, %v2409_v1 }
  0xfb   :  { %v2418_v59 = vsub.f32 %v3021_v18, %v324_v30  ;;  %v2421_v7 = vsub.f32 %v3023_v23, %v325_v38  ;;  %v614_v50 = vsel %vm78_vm0, %v450_v10, 0.0  ;;  %v617_v42 = vsel %vm78_vm0, %v451_v26, 0.0  ;;  %v3025_v18 = vld [vmem:[#allocation6_spill] sm:$0xff]  ;;  %v3027_v38 = vld [vmem:[#allocation7_spill] sm:$0xff] }
  0xfc   :  { %612 = vadd.xlane.f32.xlu1 %v611_v34  ;;  %615 = vadd.xlane.f32.xlu0 %v614_v50  ;;  %v243_v47 = vpop.xlane.xlu0 %242  ;;  %v246_v6 = vpop.xlane.xlu1 %245 }
  0xfd   :  { %3022 = vst [vmem:[#allocation4_spill] sm:$0xff] %v2418_v59  ;;  %3024 = vst [vmem:[#allocation5_spill] sm:$0xff] %v2421_v7  ;;  %v326_v54 = vmul.f32 0.125, %v243_v47  ;;  %v327_v58 = vmul.f32 0.125, %v246_v6  ;;  %v452_v51 = vmul.f32 %v2418_v59, %v2418_v59  ;;  %v453_v30 = vmul.f32 %v2421_v7, %v2421_v7 }
  0xff   :  { %v2430_v1 = vsub.f32 %v3025_v18, %v326_v54  ;;  %v2433_v23 = vsub.f32 %v3027_v38, %v327_v58  ;;  %v620_v10 = vsel %vm78_vm0, %v452_v51, 0.0  ;;  %v623_v50 = vsel %vm78_vm0, %v453_v30, 0.0  ;;  %v3029_v18 = vld [vmem:[#allocation8_spill] sm:$0xff]  ;;  %v3031_v58 = vld [vmem:[#allocation9_spill] sm:$0xff] }
 0x100   :  { %618 = vadd.xlane.f32.xlu1 %v617_v42  ;;  %621 = vadd.xlane.f32.xlu0 %v620_v10  ;;  %v249_v34 = vpop.xlane.xlu0 %248  ;;  %v252_v26 = vpop.xlane.xlu1 %251 }
 0x101   :  { %3026 = vst [vmem:[#allocation6_spill] sm:$0xff] %v2430_v1  ;;  %3028 = vst [vmem:[#allocation7_spill] sm:$0xff] %v2433_v23  ;;  %v328_v47 = vmul.f32 0.125, %v249_v34  ;;  %v329_v6 = vmul.f32 0.125, %v252_v26  ;;  %v454_v59 = vmul.f32 %v2430_v1, %v2430_v1  ;;  %v455_v54 = vmul.f32 %v2433_v23, %v2433_v23 }
 0x103   :  { %v2442_v7 = vsub.f32 %v3029_v18, %v328_v47  ;;  %v2445_v38 = vsub.f32 %v3031_v58, %v329_v6  ;;  %v626_v51 = vsel %vm78_vm0, %v454_v59, 0.0  ;;  %v629_v10 = vsel %vm78_vm0, %v455_v54, 0.0  ;;  %v3033_v18 = vld [vmem:[#allocation10_spill] sm:$0xff]  ;;  %v3035_v6 = vld [vmem:[#allocation11_spill] sm:$0xff] }
 0x104   :  { %624 = vadd.xlane.f32.xlu1 %v623_v50  ;;  %627 = vadd.xlane.f32.xlu0 %v626_v51  ;;  %v255_v42 = vpop.xlane.xlu0 %254  ;;  %v258_v30 = vpop.xlane.xlu1 %257 }
 0x105   :  { %3030 = vst [vmem:[#allocation8_spill] sm:$0xff] %v2442_v7  ;;  %3032 = vst [vmem:[#allocation9_spill] sm:$0xff] %v2445_v38  ;;  %v330_v34 = vmul.f32 0.125, %v255_v42  ;;  %v331_v26 = vmul.f32 0.125, %v258_v30  ;;  %v456_v1 = vmul.f32 %v2442_v7, %v2442_v7  ;;  %v457_v47 = vmul.f32 %v2445_v38, %v2445_v38 }
 0x107   :  { %v2454_v23 = vsub.f32 %v3033_v18, %v330_v34  ;;  %v2457_v58 = vsub.f32 %v3035_v6, %v331_v26  ;;  %v632_v59 = vsel %vm78_vm0, %v456_v1, 0.0  ;;  %v635_v51 = vsel %vm78_vm0, %v457_v47, 0.0  ;;  %v3037_v18 = vld [vmem:[#allocation12_spill] sm:$0xff]  ;;  %v3039_v26 = vld [vmem:[#allocation13_spill] sm:$0xff] }
 0x108   :  { %630 = vadd.xlane.f32.xlu1 %v629_v10  ;;  %633 = vadd.xlane.f32.xlu0 %v632_v59  ;;  %v261_v50 = vpop.xlane.xlu0 %260  ;;  %v264_v54 = vpop.xlane.xlu1 %263 }
 0x109   :  { %3034 = vst [vmem:[#allocation10_spill] sm:$0xff] %v2454_v23  ;;  %3036 = vst [vmem:[#allocation11_spill] sm:$0xff] %v2457_v58  ;;  %v332_v42 = vmul.f32 0.125, %v261_v50  ;;  %v333_v30 = vmul.f32 0.125, %v264_v54  ;;  %v458_v7 = vmul.f32 %v2454_v23, %v2454_v23  ;;  %v459_v34 = vmul.f32 %v2457_v58, %v2457_v58 }
 0x10b   :  { %v2466_v38 = vsub.f32 %v3037_v18, %v332_v42  ;;  %v2469_v6 = vsub.f32 %v3039_v26, %v333_v30  ;;  %v638_v1 = vsel %vm78_vm0, %v458_v7, 0.0  ;;  %v641_v59 = vsel %vm78_vm0, %v459_v34, 0.0  ;;  %v3041_v18 = vld [vmem:[#allocation14_spill] sm:$0xff] }
 0x10c   :  { %636 = vadd.xlane.f32.xlu1 %v635_v51  ;;  %639 = vadd.xlane.f32.xlu0 %v638_v1  ;;  %v267_v10 = vpop.xlane.xlu0 %266  ;;  %v270_v47 = vpop.xlane.xlu1 %269 }
 0x10d   :  { %3038 = vst [vmem:[#allocation12_spill] sm:$0xff] %v2466_v38  ;;  %3040 = vst [vmem:[#allocation13_spill] sm:$0xff] %v2469_v6  ;;  %v334_v50 = vmul.f32 0.125, %v267_v10  ;;  %v335_v54 = vmul.f32 0.125, %v270_v47  ;;  %v460_v23 = vmul.f32 %v2466_v38, %v2466_v38  ;;  %v461_v42 = vmul.f32 %v2469_v6, %v2469_v6 }
 0x10f   :  { %v2478_v58 = vsub.f32 %v3041_v18, %v334_v50  ;;  %v2481_v30 = vsub.f32 %v2101_v46, %v335_v54  ;;  %v644_v7 = vsel %vm78_vm0, %v460_v23, 0.0  ;;  %v647_v51 = vsel %vm78_vm0, %v461_v42, 0.0 }
 0x110   :  { %642 = vadd.xlane.f32.xlu1 %v641_v59  ;;  %645 = vadd.xlane.f32.xlu0 %v644_v7 }
 0x111   :  { %3042 = vst [vmem:[#allocation14_spill] sm:$0xff] %v2478_v58  ;;  %3043 = vst [vmem:[#allocation22_spill] sm:$0xff] %v2481_v30  ;;  %v462_v34 = vmul.f32 %v2478_v58, %v2478_v58  ;;  %v463_v26 = vmul.f32 %v2481_v30, %v2481_v30 }
 0x113   :  { %v650_v1 = vsel %vm78_vm0, %v462_v34, 0.0  ;;  %v653_v10 = vsel %vm78_vm0, %v463_v26, 0.0 }
 0x114   :  { %648 = vadd.xlane.f32.xlu1 %v647_v51  ;;  %651 = vadd.xlane.f32.xlu0 %v650_v1 }
 0x118   :  { %654 = vadd.xlane.f32.xlu1 %v653_v10 }
 0x125   :  { %v466_v46 = vpop.xlane.xlu0 %465 }
 0x126   :  { %v656_v47 = vmul.f32 0.125, %v466_v46 }
 0x128   :  { %v720_v23 = vadd.f32 1e-05, %v656_v47 }
 0x129   :  { %v469_v59 = vpop.xlane.xlu1 %468  ;;  %v472_v50 = vpop.xlane.xlu0 %471 }
 0x12a   :  { %1509 = vrsqrt.f32 %v720_v23  ;;  %v657_v54 = vmul.f32 0.125, %v469_v59  ;;  %v658_v42 = vmul.f32 0.125, %v472_v50  ;;  %v2494_v23 = vld [vmem:[%s2960_s1] ss:$0 sm:$0xff] }
 0x12c   :  { %v721_v18 = vadd.f32 1e-05, %v657_v54  ;;  %v722_v7 = vadd.f32 1e-05, %v658_v42 }
 0x12d   :  { %v475_v58 = vpop.xlane.xlu1 %474  ;;  %v478_v6 = vpop.xlane.xlu0 %477 }
 0x12e   :  { %1511 = vrsqrt.f32 %v721_v18  ;;  %v659_v30 = vmul.f32 0.125, %v475_v58  ;;  %v660_v34 = vmul.f32 0.125, %v478_v6 }
 0x12f   :  { %1513 = vrsqrt.f32 %v722_v7 }
 0x130   :  { %v723_v51 = vadd.f32 1e-05, %v659_v30  ;;  %v724_v1 = vadd.f32 1e-05, %v660_v34  ;;  %v2500_v30 = vld [vmem:[%s2961_s2] ss:$0 sm:$0xff] }
 0x131   :  { %v481_v26 = vpop.xlane.xlu1 %480  ;;  %v484_v10 = vpop.xlane.xlu0 %483 }
 0x132   :  { %1515 = vrsqrt.f32 %v723_v51  ;;  %v661_v46 = vmul.f32 0.125, %v481_v26  ;;  %v662_v47 = vmul.f32 0.125, %v484_v10 }
 0x133   :  { %1517 = vrsqrt.f32 %v724_v1 }
 0x134   :  { %v1510_v38 = vpop.eup %1509  ;;  %v725_v59 = vadd.f32 1e-05, %v661_v46  ;;  %v726_v50 = vadd.f32 1e-05, %v662_v47  ;;  %v3044_v47 = vld [vmem:[#allocation15_spill] sm:$0xff] }
 0x135   :  { %v848_v58 = vmul.f32 %v1510_v38, %v2108_v39  ;;  %v487_v6 = vpop.xlane.xlu1 %486  ;;  %v490_v54 = vpop.xlane.xlu0 %489 }
 0x136   :  { %1519 = vrsqrt.f32 %v725_v59  ;;  %v663_v42 = vmul.f32 0.125, %v487_v6  ;;  %v664_v18 = vmul.f32 0.125, %v490_v54 }
 0x137   :  { %v919_v7 = vmul.f32 %v2494_v23, %v848_v58  ;;  %1521 = vrsqrt.f32 %v726_v50 }
 0x138   :  { %v1512_v34 = vpop.eup %1511  ;;  %v727_v51 = vadd.f32 1e-05, %v663_v42  ;;  %v728_v1 = vadd.f32 1e-05, %v664_v18 }
 0x139   :  { %v1514_v26 = vpop.eup %1513  ;;  %v990_v39 = vadd.f32 %v2500_v30, %v919_v7  ;;  %v849_v38 = vmul.f32 %v1512_v34, %v2118_v63  ;;  %v493_v10 = vpop.xlane.xlu1 %492 }
 0x13a   :  { %v496_v46 = vpop.xlane.xlu0 %495  ;;  %v850_v3 = vmul.f32 %v1514_v26, %v3044_v47  ;;  %1523 = vrsqrt.f32 %v727_v51  ;;  %v665_v59 = vmul.f32 0.125, %v493_v10 }
 0x13b   :  { %v666_v6 = vmul.f32 0.125, %v496_v46  ;;  %v1445_v54 = vpack.c.bf16 %v990_v39, %v990_v39  ;;  %v920_v58 = vmul.f32 %v2494_v23, %v849_v38  ;;  %1525 = vrsqrt.f32 %v728_v1 }
 0x13c   :  { %v1516_v50 = vpop.eup %1515  ;;  %v921_v42 = vmul.f32 %v2494_v23, %v850_v3  ;;  %v729_v18 = vadd.f32 1e-05, %v665_v59 }
 0x13d   :  { %v730_v43 = vadd.f32 1e-05, %v666_v6  ;;  %v1518_v60 = vpop.eup %1517  ;;  %1311 = vst.msk [vmem:[%s2962_s3] sm:$0xf] %vm1310_vm1, %v1445_v54  ;;  %v991_v63 = vadd.f32 %v2500_v30, %v920_v58  ;;  %v851_v7 = vmul.f32 %v1516_v50, %v2121_v14  ;;  %v499_v34 = vpop.xlane.xlu1 %498 }
 0x13e   :  { %v502_v51 = vpop.xlane.xlu0 %501  ;;  %v992_v26 = vadd.f32 %v2500_v30, %v921_v42  ;;  %v852_v1 = vmul.f32 %v1518_v60, %v2130_v2  ;;  %1527 = vrsqrt.f32 %v729_v18  ;;  %v667_v3 = vmul.f32 0.125, %v499_v34 }
 0x13f   :  { %v1446_v39 = vpack.c.bf16 %v991_v63, %v991_v63  ;;  %v922_v38 = vmul.f32 %v2494_v23, %v851_v7  ;;  %1529 = vrsqrt.f32 %v730_v43  ;;  %v668_v10 = vmul.f32 0.125, %v502_v51 }
 0x140   :  { %v1520_v46 = vpop.eup %1519  ;;  %v1447_v47 = vpack.c.bf16 %v992_v26, %v992_v26  ;;  %v923_v59 = vmul.f32 %v2494_v23, %v852_v1  ;;  %v731_v6 = vadd.f32 1e-05, %v667_v3 }
 0x141   :  { %v1522_v54 = vpop.eup %1521  ;;  %1312 = vst.msk [vmem:[%s2962_s3 + $0x4] sm:$0xf] %vm1310_vm1, %v1446_v39  ;;  %v993_v14 = vadd.f32 %v2500_v30, %v922_v38  ;;  %v853_v2 = vmul.f32 %v1520_v46, %v2133_v5  ;;  %v732_v60 = vadd.f32 1e-05, %v668_v10  ;;  %v505_v58 = vpop.xlane.xlu1 %504 }
 0x142   :  { %v508_v50 = vpop.xlane.xlu0 %507  ;;  %1313 = vst.msk [vmem:[%s2962_s3 + $0x8] sm:$0xf] %vm1310_vm1, %v1447_v47  ;;  %v994_v43 = vadd.f32 %v2500_v30, %v923_v59  ;;  %v854_v42 = vmul.f32 %v1522_v54, %v2142_v15  ;;  %1531 = vrsqrt.f32 %v731_v6  ;;  %v669_v18 = vmul.f32 0.125, %v505_v58 }
 0x143   :  { %v1448_v63 = vpack.c.bf16 %v993_v14, %v993_v14  ;;  %v924_v7 = vmul.f32 %v2494_v23, %v853_v2  ;;  %1533 = vrsqrt.f32 %v732_v60  ;;  %v670_v34 = vmul.f32 0.125, %v508_v50 }
 0x144   :  { %v1524_v5 = vpop.eup %1523  ;;  %v1449_v51 = vpack.c.bf16 %v994_v43, %v994_v43  ;;  %v925_v26 = vmul.f32 %v2494_v23, %v854_v42  ;;  %v733_v1 = vadd.f32 1e-05, %v669_v18 }
 0x145   :  { %v1526_v3 = vpop.eup %1525  ;;  %1314 = vst.msk [vmem:[%s2962_s3 + $0xc] sm:$0xf] %vm1310_vm1, %v1448_v63  ;;  %v995_v15 = vadd.f32 %v2500_v30, %v924_v7  ;;  %v855_v39 = vmul.f32 %v1524_v5, %v2145_v9  ;;  %v734_v38 = vadd.f32 1e-05, %v670_v34  ;;  %v511_v10 = vpop.xlane.xlu1 %510 }
 0x146   :  { %v514_v46 = vpop.xlane.xlu0 %513  ;;  %1315 = vst.msk [vmem:[%s2962_s3 + $0x10] sm:$0xf] %vm1310_vm1, %v1449_v51  ;;  %v996_v47 = vadd.f32 %v2500_v30, %v925_v26  ;;  %v856_v59 = vmul.f32 %v1526_v3, %v2154_v0  ;;  %1535 = vrsqrt.f32 %v733_v1  ;;  %v671_v6 = vmul.f32 0.125, %v511_v10 }
 0x147   :  { %v1450_v54 = vpack.c.bf16 %v995_v15, %v995_v15  ;;  %v926_v14 = vmul.f32 %v2494_v23, %v855_v39  ;;  %1537 = vrsqrt.f32 %v734_v38  ;;  %v672_v2 = vmul.f32 0.125, %v514_v46 }
 0x148   :  { %v1528_v9 = vpop.eup %1527  ;;  %v1451_v60 = vpack.c.bf16 %v996_v47, %v996_v47  ;;  %v927_v58 = vmul.f32 %v2494_v23, %v856_v59  ;;  %v735_v50 = vadd.f32 1e-05, %v671_v6 }
 0x149   :  { %v1530_v43 = vpop.eup %1529  ;;  %1316 = vst.msk [vmem:[%s2962_s3 + $0x14] sm:$0xf] %vm1310_vm1, %v1450_v54  ;;  %v997_v0 = vadd.f32 %v2500_v30, %v926_v14  ;;  %v857_v42 = vmul.f32 %v1528_v9, %v2157_v13  ;;  %v736_v18 = vadd.f32 1e-05, %v672_v2  ;;  %v517_v63 = vpop.xlane.xlu1 %516 }
 0x14a   :  { %v520_v7 = vpop.xlane.xlu0 %519  ;;  %1317 = vst.msk [vmem:[%s2962_s3 + $0x18] sm:$0xf] %vm1310_vm1, %v1451_v60  ;;  %v998_v34 = vadd.f32 %v2500_v30, %v927_v58  ;;  %v858_v5 = vmul.f32 %v1530_v43, %v2166_v22  ;;  %1539 = vrsqrt.f32 %v735_v50  ;;  %v673_v51 = vmul.f32 0.125, %v517_v63 }
 0x14b   :  { %v1452_v26 = vpack.c.bf16 %v997_v0, %v997_v0  ;;  %v928_v1 = vmul.f32 %v2494_v23, %v857_v42  ;;  %1541 = vrsqrt.f32 %v736_v18  ;;  %v674_v3 = vmul.f32 0.125, %v520_v7 }
 0x14c   :  { %v1532_v13 = vpop.eup %1531  ;;  %v1453_v15 = vpack.c.bf16 %v998_v34, %v998_v34  ;;  %v929_v39 = vmul.f32 %v2494_v23, %v858_v5  ;;  %v737_v38 = vadd.f32 1e-05, %v673_v51 }
 0x14d   :  { %v1534_v10 = vpop.eup %1533  ;;  %1318 = vst.msk [vmem:[%s2962_s3 + $0x1c] sm:$0xf] %vm1310_vm1, %v1452_v26  ;;  %v999_v22 = vadd.f32 %v2500_v30, %v928_v1  ;;  %v859_v46 = vmul.f32 %v1532_v13, %v2169_v17  ;;  %v738_v47 = vadd.f32 1e-05, %v674_v3  ;;  %v523_v59 = vpop.xlane.xlu1 %522 }
 0x14e   :  { %v526_v6 = vpop.xlane.xlu0 %525  ;;  %1319 = vst.msk [vmem:[%s2962_s3 + $0x20] sm:$0xf] %vm1310_vm1, %v1453_v15  ;;  %v1000_v54 = vadd.f32 %v2500_v30, %v929_v39  ;;  %v860_v14 = vmul.f32 %v1534_v10, %v2178_v55  ;;  %1543 = vrsqrt.f32 %v737_v38  ;;  %v675_v2 = vmul.f32 0.125, %v523_v59 }
 0x14f   :  { %v1454_v9 = vpack.c.bf16 %v999_v22, %v999_v22  ;;  %v930_v60 = vmul.f32 %v2494_v23, %v859_v46  ;;  %1545 = vrsqrt.f32 %v738_v47  ;;  %v676_v58 = vmul.f32 0.125, %v526_v6 }
 0x150   :  { %v1536_v17 = vpop.eup %1535  ;;  %v1455_v50 = vpack.c.bf16 %v1000_v54, %v1000_v54  ;;  %v931_v43 = vmul.f32 %v2494_v23, %v860_v14  ;;  %v739_v0 = vadd.f32 1e-05, %v675_v2 }
 0x151   :  { %v1538_v42 = vpop.eup %1537  ;;  %1320 = vst.msk [vmem:[%s2962_s3 + $0x24] sm:$0xf] %vm1310_vm1, %v1454_v9  ;;  %v1001_v55 = vadd.f32 %v2500_v30, %v930_v60  ;;  %v861_v18 = vmul.f32 %v1536_v17, %v2181_v21  ;;  %v740_v63 = vadd.f32 1e-05, %v676_v58  ;;  %v529_v7 = vpop.xlane.xlu1 %528 }
 0x152   :  { %v532_v34 = vpop.xlane.xlu0 %531  ;;  %1321 = vst.msk [vmem:[%s2962_s3 + $0x28] sm:$0xf] %vm1310_vm1, %v1455_v50  ;;  %v1002_v5 = vadd.f32 %v2500_v30, %v931_v43  ;;  %v862_v51 = vmul.f32 %v1538_v42, %v2190_v62  ;;  %1547 = vrsqrt.f32 %v739_v0  ;;  %v677_v26 = vmul.f32 0.125, %v529_v7 }
 0x153   :  { %v1456_v1 = vpack.c.bf16 %v1001_v55, %v1001_v55  ;;  %v932_v3 = vmul.f32 %v2494_v23, %v861_v18  ;;  %1549 = vrsqrt.f32 %v740_v63  ;;  %v678_v13 = vmul.f32 0.125, %v532_v34 }
 0x154   :  { %v1540_v21 = vpop.eup %1539  ;;  %v1457_v15 = vpack.c.bf16 %v1002_v5, %v1002_v5  ;;  %v933_v39 = vmul.f32 %v2494_v23, %v862_v51  ;;  %v741_v38 = vadd.f32 1e-05, %v677_v26 }
 0x155   :  { %v1542_v10 = vpop.eup %1541  ;;  %1322 = vst.msk [vmem:[%s2962_s3 + $0x2c] sm:$0xf] %vm1310_vm1, %v1456_v1  ;;  %v1003_v62 = vadd.f32 %v2500_v30, %v932_v3  ;;  %v863_v22 = vmul.f32 %v1540_v21, %v2193_v25  ;;  %v742_v46 = vadd.f32 1e-05, %v678_v13  ;;  %v535_v47 = vpop.xlane.xlu1 %534 }
 0x156   :  { %v538_v59 = vpop.xlane.xlu0 %537  ;;  %1323 = vst.msk [vmem:[%s2962_s3 + $0x30] sm:$0xf] %vm1310_vm1, %v1457_v15  ;;  %v1004_v6 = vadd.f32 %v2500_v30, %v933_v39  ;;  %v864_v54 = vmul.f32 %v1542_v10, %v2202_v31  ;;  %1551 = vrsqrt.f32 %v741_v38  ;;  %v679_v14 = vmul.f32 0.125, %v535_v47 }
 0x157   :  { %v1458_v2 = vpack.c.bf16 %v1003_v62, %v1003_v62  ;;  %v934_v9 = vmul.f32 %v2494_v23, %v863_v22  ;;  %1553 = vrsqrt.f32 %v742_v46  ;;  %v680_v60 = vmul.f32 0.125, %v538_v59 }
 0x158   :  { %v1544_v25 = vpop.eup %1543  ;;  %v1459_v58 = vpack.c.bf16 %v1004_v6, %v1004_v6  ;;  %v935_v17 = vmul.f32 %v2494_v23, %v864_v54  ;;  %v743_v50 = vadd.f32 1e-05, %v679_v14 }
 0x159   :  { %v1546_v43 = vpop.eup %1545  ;;  %1324 = vst.msk [vmem:[%s2962_s3 + $0x34] sm:$0xf] %vm1310_vm1, %v1458_v2  ;;  %v1005_v31 = vadd.f32 %v2500_v30, %v934_v9  ;;  %v865_v0 = vmul.f32 %v1544_v25, %v2205_v29  ;;  %v744_v42 = vadd.f32 1e-05, %v680_v60  ;;  %v541_v55 = vpop.xlane.xlu1 %540 }
 0x15a   :  { %v544_v18 = vpop.xlane.xlu0 %543  ;;  %1325 = vst.msk [vmem:[%s2962_s3 + $0x38] sm:$0xf] %vm1310_vm1, %v1459_v58  ;;  %v1006_v63 = vadd.f32 %v2500_v30, %v935_v17  ;;  %v866_v7 = vmul.f32 %v1546_v43, %v2214_v8  ;;  %1555 = vrsqrt.f32 %v743_v50  ;;  %v681_v34 = vmul.f32 0.125, %v541_v55 }
 0x15b   :  { %v1460_v5 = vpack.c.bf16 %v1005_v31, %v1005_v31  ;;  %v936_v51 = vmul.f32 %v2494_v23, %v865_v0  ;;  %1557 = vrsqrt.f32 %v744_v42  ;;  %v682_v26 = vmul.f32 0.125, %v544_v18 }
 0x15c   :  { %v1548_v29 = vpop.eup %1547  ;;  %v1461_v1 = vpack.c.bf16 %v1006_v63, %v1006_v63  ;;  %v937_v3 = vmul.f32 %v2494_v23, %v866_v7  ;;  %v745_v13 = vadd.f32 1e-05, %v681_v34 }
 0x15d   :  { %v1550_v21 = vpop.eup %1549  ;;  %1326 = vst.msk [vmem:[%s2962_s3 + $0x3c] sm:$0xf] %vm1310_vm1, %v1460_v5  ;;  %v1007_v8 = vadd.f32 %v2500_v30, %v936_v51  ;;  %v867_v15 = vmul.f32 %v1548_v29, %v2217_v33  ;;  %v746_v39 = vadd.f32 1e-05, %v682_v26  ;;  %v547_v38 = vpop.xlane.xlu1 %546 }
 0x15e   :  { %v550_v10 = vpop.xlane.xlu0 %549  ;;  %1327 = vst.msk [vmem:[%s2962_s3 + $0x40] sm:$0xf] %vm1310_vm1, %v1461_v1  ;;  %v1008_v62 = vadd.f32 %v2500_v30, %v937_v3  ;;  %v868_v22 = vmul.f32 %v1550_v21, %v2226_v12  ;;  %1559 = vrsqrt.f32 %v745_v13  ;;  %v683_v46 = vmul.f32 0.125, %v547_v38 }
 0x15f   :  { %v1462_v47 = vpack.c.bf16 %v1007_v8, %v1007_v8  ;;  %v938_v59 = vmul.f32 %v2494_v23, %v867_v15  ;;  %1561 = vrsqrt.f32 %v746_v39  ;;  %v684_v6 = vmul.f32 0.125, %v550_v10 }
 0x160   :  { %v1552_v33 = vpop.eup %1551  ;;  %v1463_v54 = vpack.c.bf16 %v1008_v62, %v1008_v62  ;;  %v939_v14 = vmul.f32 %v2494_v23, %v868_v22  ;;  %v747_v2 = vadd.f32 1e-05, %v683_v46 }
 0x161   :  { %v1554_v9 = vpop.eup %1553  ;;  %1328 = vst.msk [vmem:[%s2962_s3 + $0x44] sm:$0xf] %vm1310_vm1, %v1462_v47  ;;  %v1009_v12 = vadd.f32 %v2500_v30, %v938_v59  ;;  %v869_v60 = vmul.f32 %v1552_v33, %v2229_v37  ;;  %v748_v25 = vadd.f32 1e-05, %v684_v6  ;;  %v553_v58 = vpop.xlane.xlu1 %552 }
 0x162   :  { %v556_v17 = vpop.xlane.xlu0 %555  ;;  %1329 = vst.msk [vmem:[%s2962_s3 + $0x48] sm:$0xf] %vm1310_vm1, %v1463_v54  ;;  %v1010_v50 = vadd.f32 %v2500_v30, %v939_v14  ;;  %v870_v43 = vmul.f32 %v1554_v9, %v2238_v16  ;;  %1563 = vrsqrt.f32 %v747_v2  ;;  %v685_v31 = vmul.f32 0.125, %v553_v58 }
 0x163   :  { %v1464_v0 = vpack.c.bf16 %v1009_v12, %v1009_v12  ;;  %v940_v42 = vmul.f32 %v2494_v23, %v869_v60  ;;  %1565 = vrsqrt.f32 %v748_v25  ;;  %v686_v55 = vmul.f32 0.125, %v556_v17 }
 0x164   :  { %v1556_v37 = vpop.eup %1555  ;;  %v1465_v18 = vpack.c.bf16 %v1010_v50, %v1010_v50  ;;  %v941_v63 = vmul.f32 %v2494_v23, %v870_v43  ;;  %v749_v7 = vadd.f32 1e-05, %v685_v31 }
 0x165   :  { %v1558_v34 = vpop.eup %1557  ;;  %1330 = vst.msk [vmem:[%s2962_s3 + $0x4c] sm:$0xf] %vm1310_vm1, %v1464_v0  ;;  %v1011_v16 = vadd.f32 %v2500_v30, %v940_v42  ;;  %v871_v5 = vmul.f32 %v1556_v37, %v2241_v41  ;;  %v750_v51 = vadd.f32 1e-05, %v686_v55  ;;  %v559_v26 = vpop.xlane.xlu1 %558 }
 0x166   :  { %v562_v29 = vpop.xlane.xlu0 %561  ;;  %1331 = vst.msk [vmem:[%s2962_s3 + $0x50] sm:$0xf] %vm1310_vm1, %v1465_v18  ;;  %v1012_v1 = vadd.f32 %v2500_v30, %v941_v63  ;;  %v872_v3 = vmul.f32 %v1558_v34, %v2250_v20  ;;  %1567 = vrsqrt.f32 %v749_v7  ;;  %v687_v13 = vmul.f32 0.125, %v559_v26 }
 0x167   :  { %v1466_v21 = vpack.c.bf16 %v1011_v16, %v1011_v16  ;;  %v942_v8 = vmul.f32 %v2494_v23, %v871_v5  ;;  %1569 = vrsqrt.f32 %v750_v51  ;;  %v688_v15 = vmul.f32 0.125, %v562_v29 }
 0x168   :  { %v1560_v41 = vpop.eup %1559  ;;  %v1467_v39 = vpack.c.bf16 %v1012_v1, %v1012_v1  ;;  %v943_v38 = vmul.f32 %v2494_v23, %v872_v3  ;;  %v751_v10 = vadd.f32 1e-05, %v687_v13 }
 0x169   :  { %v1562_v62 = vpop.eup %1561  ;;  %1332 = vst.msk [vmem:[%s2962_s3 + $0x54] sm:$0xf] %vm1310_vm1, %v1466_v21  ;;  %v1013_v20 = vadd.f32 %v2500_v30, %v942_v8  ;;  %v873_v22 = vmul.f32 %v1560_v41, %v2253_v45  ;;  %v752_v46 = vadd.f32 1e-05, %v688_v15  ;;  %v565_v47 = vpop.xlane.xlu1 %564 }
 0x16a   :  { %v568_v59 = vpop.xlane.xlu0 %567  ;;  %1333 = vst.msk [vmem:[%s2962_s3 + $0x58] sm:$0xf] %vm1310_vm1, %v1467_v39  ;;  %v1014_v6 = vadd.f32 %v2500_v30, %v943_v38  ;;  %v874_v33 = vmul.f32 %v1562_v62, %v2262_v24  ;;  %1571 = vrsqrt.f32 %v751_v10  ;;  %v689_v54 = vmul.f32 0.125, %v565_v47 }
 0x16b   :  { %v1468_v14 = vpack.c.bf16 %v1013_v20, %v1013_v20  ;;  %v944_v2 = vmul.f32 %v2494_v23, %v873_v22  ;;  %1573 = vrsqrt.f32 %v752_v46  ;;  %v690_v9 = vmul.f32 0.125, %v568_v59 }
 0x16c   :  { %v1564_v45 = vpop.eup %1563  ;;  %v1469_v12 = vpack.c.bf16 %v1014_v6, %v1014_v6  ;;  %v945_v60 = vmul.f32 %v2494_v23, %v874_v33  ;;  %v753_v25 = vadd.f32 1e-05, %v689_v54 }
 0x16d   :  { %v1566_v58 = vpop.eup %1565  ;;  %1334 = vst.msk [vmem:[%s2962_s3 + $0x5c] sm:$0xf] %vm1310_vm1, %v1468_v14  ;;  %v1015_v24 = vadd.f32 %v2500_v30, %v944_v2  ;;  %v875_v17 = vmul.f32 %v1564_v45, %v2265_v49  ;;  %v754_v50 = vadd.f32 1e-05, %v690_v9  ;;  %v571_v43 = vpop.xlane.xlu1 %570 }
 0x16e   :  { %v574_v31 = vpop.xlane.xlu0 %573  ;;  %1335 = vst.msk [vmem:[%s2962_s3 + $0x60] sm:$0xf] %vm1310_vm1, %v1469_v12  ;;  %v1016_v0 = vadd.f32 %v2500_v30, %v945_v60  ;;  %v876_v42 = vmul.f32 %v1566_v58, %v2274_v28  ;;  %1575 = vrsqrt.f32 %v753_v25  ;;  %v691_v55 = vmul.f32 0.125, %v571_v43 }
 0x16f   :  { %v1470_v37 = vpack.c.bf16 %v1015_v24, %v1015_v24  ;;  %v946_v18 = vmul.f32 %v2494_v23, %v875_v17  ;;  %1577 = vrsqrt.f32 %v754_v50  ;;  %v692_v63 = vmul.f32 0.125, %v574_v31 }
 0x170   :  { %v1568_v49 = vpop.eup %1567  ;;  %v1471_v7 = vpack.c.bf16 %v1016_v0, %v1016_v0  ;;  %v947_v34 = vmul.f32 %v2494_v23, %v876_v42  ;;  %v755_v16 = vadd.f32 1e-05, %v691_v55 }
 0x171   :  { %v1570_v5 = vpop.eup %1569  ;;  %1336 = vst.msk [vmem:[%s2962_s3 + $0x64] sm:$0xf] %vm1310_vm1, %v1470_v37  ;;  %v1017_v28 = vadd.f32 %v2500_v30, %v946_v18  ;;  %v877_v51 = vmul.f32 %v1568_v49, %v2277_v53  ;;  %v756_v26 = vadd.f32 1e-05, %v692_v63  ;;  %v577_v29 = vpop.xlane.xlu1 %576 }
 0x172   :  { %v580_v1 = vpop.xlane.xlu0 %579  ;;  %1337 = vst.msk [vmem:[%s2962_s3 + $0x68] sm:$0xf] %vm1310_vm1, %v1471_v7  ;;  %v1018_v3 = vadd.f32 %v2500_v30, %v947_v34  ;;  %v878_v13 = vmul.f32 %v1570_v5, %v2286_v32  ;;  %1579 = vrsqrt.f32 %v755_v16  ;;  %v693_v21 = vmul.f32 0.125, %v577_v29 }
 0x173   :  { %v1472_v8 = vpack.c.bf16 %v1017_v28, %v1017_v28  ;;  %v948_v15 = vmul.f32 %v2494_v23, %v877_v51  ;;  %1581 = vrsqrt.f32 %v756_v26  ;;  %v694_v41 = vmul.f32 0.125, %v580_v1 }
 0x174   :  { %v1572_v53 = vpop.eup %1571  ;;  %v1473_v39 = vpack.c.bf16 %v1018_v3, %v1018_v3  ;;  %v949_v38 = vmul.f32 %v2494_v23, %v878_v13  ;;  %v757_v10 = vadd.f32 1e-05, %v693_v21 }
 0x175   :  { %v1574_v62 = vpop.eup %1573  ;;  %1338 = vst.msk [vmem:[%s2962_s3 + $0x6c] sm:$0xf] %vm1310_vm1, %v1472_v8  ;;  %v1019_v32 = vadd.f32 %v2500_v30, %v948_v15  ;;  %v879_v20 = vmul.f32 %v1572_v53, %v2289_v57  ;;  %v758_v22 = vadd.f32 1e-05, %v694_v41  ;;  %v583_v46 = vpop.xlane.xlu1 %582 }
 0x176   :  { %v586_v47 = vpop.xlane.xlu0 %585  ;;  %1339 = vst.msk [vmem:[%s2962_s3 + $0x70] sm:$0xf] %vm1310_vm1, %v1473_v39  ;;  %v1020_v59 = vadd.f32 %v2500_v30, %v949_v38  ;;  %v880_v6 = vmul.f32 %v1574_v62, %v2298_v36  ;;  %1583 = vrsqrt.f32 %v757_v10  ;;  %v695_v33 = vmul.f32 0.125, %v583_v46 }
 0x177   :  { %v1474_v54 = vpack.c.bf16 %v1019_v32, %v1019_v32  ;;  %v950_v14 = vmul.f32 %v2494_v23, %v879_v20  ;;  %1585 = vrsqrt.f32 %v758_v22  ;;  %v696_v2 = vmul.f32 0.125, %v586_v47 }
 0x178   :  { %v1576_v57 = vpop.eup %1575  ;;  %v1475_v9 = vpack.c.bf16 %v1020_v59, %v1020_v59  ;;  %v951_v45 = vmul.f32 %v2494_v23, %v880_v6  ;;  %v759_v12 = vadd.f32 1e-05, %v695_v33 }
 0x179   :  { %v1578_v60 = vpop.eup %1577  ;;  %1340 = vst.msk [vmem:[%s2962_s3 + $0x74] sm:$0xf] %vm1310_vm1, %v1474_v54  ;;  %v1021_v36 = vadd.f32 %v2500_v30, %v950_v14  ;;  %v881_v25 = vmul.f32 %v1576_v57, %v2301_v61  ;;  %v760_v58 = vadd.f32 1e-05, %v696_v2  ;;  %v589_v24 = vpop.xlane.xlu1 %588 }
 0x17a   :  { %v592_v17 = vpop.xlane.xlu0 %591  ;;  %1341 = vst.msk [vmem:[%s2962_s3 + $0x78] sm:$0xf] %vm1310_vm1, %v1475_v9  ;;  %v1022_v50 = vadd.f32 %v2500_v30, %v951_v45  ;;  %v882_v43 = vmul.f32 %v1578_v60, %v2310_v40  ;;  %1587 = vrsqrt.f32 %v759_v12  ;;  %v697_v31 = vmul.f32 0.125, %v589_v24 }
 0x17b   :  { %v1476_v0 = vpack.c.bf16 %v1021_v36, %v1021_v36  ;;  %v952_v42 = vmul.f32 %v2494_v23, %v881_v25  ;;  %1589 = vrsqrt.f32 %v760_v58  ;;  %v698_v55 = vmul.f32 0.125, %v592_v17 }
 0x17c   :  { %v1580_v61 = vpop.eup %1579  ;;  %v1477_v37 = vpack.c.bf16 %v1022_v50, %v1022_v50  ;;  %v953_v18 = vmul.f32 %v2494_v23, %v882_v43  ;;  %v761_v63 = vadd.f32 1e-05, %v697_v31 }
 0x17d   :  { %v1582_v49 = vpop.eup %1581  ;;  %1342 = vst.msk [vmem:[%s2962_s3 + $0x7c] sm:$0xf] %vm1310_vm1, %v1476_v0  ;;  %v1023_v40 = vadd.f32 %v2500_v30, %v952_v42  ;;  %v883_v7 = vmul.f32 %v1580_v61, %v2313_v4  ;;  %v762_v34 = vadd.f32 1e-05, %v698_v55  ;;  %v595_v16 = vpop.xlane.xlu1 %594 }
 0x17e   :  { %v598_v5 = vpop.xlane.xlu0 %597  ;;  %1343 = vst.msk [vmem:[%s2962_s3 + $0x80] sm:$0xf] %vm1310_vm1, %v1477_v37  ;;  %v1024_v28 = vadd.f32 %v2500_v30, %v953_v18  ;;  %v884_v51 = vmul.f32 %v1582_v49, %v2322_v44  ;;  %1591 = vrsqrt.f32 %v761_v63  ;;  %v699_v26 = vmul.f32 0.125, %v595_v16 }
 0x17f   :  { %v1478_v29 = vpack.c.bf16 %v1023_v40, %v1023_v40  ;;  %v954_v1 = vmul.f32 %v2494_v23, %v883_v7  ;;  %1593 = vrsqrt.f32 %v762_v34  ;;  %v700_v3 = vmul.f32 0.125, %v598_v5 }
 0x180   :  { %v1584_v4 = vpop.eup %1583  ;;  %v1479_v13 = vpack.c.bf16 %v1024_v28, %v1024_v28  ;;  %v955_v21 = vmul.f32 %v2494_v23, %v884_v51  ;;  %v763_v8 = vadd.f32 1e-05, %v699_v26 }
 0x181   :  { %v1586_v15 = vpop.eup %1585  ;;  %1344 = vst.msk [vmem:[%s2962_s3 + $0x84] sm:$0xf] %vm1310_vm1, %v1478_v29  ;;  %v1025_v44 = vadd.f32 %v2500_v30, %v954_v1  ;;  %v885_v41 = vmul.f32 %v1584_v4, %v2325_v11  ;;  %v764_v53 = vadd.f32 1e-05, %v700_v3  ;;  %v601_v39 = vpop.xlane.xlu1 %600  ;;  %v3045_v1 = vld [vmem:[#allocation16_spill] sm:$0xff] }
 0x182   :  { %v604_v38 = vpop.xlane.xlu0 %603  ;;  %1345 = vst.msk [vmem:[%s2962_s3 + $0x88] sm:$0xf] %vm1310_vm1, %v1479_v13  ;;  %v1026_v10 = vadd.f32 %v2500_v30, %v955_v21  ;;  %v886_v62 = vmul.f32 %v1586_v15, %v2334_v48  ;;  %1595 = vrsqrt.f32 %v763_v8  ;;  %v701_v32 = vmul.f32 0.125, %v601_v39 }
 0x183   :  { %v1480_v20 = vpack.c.bf16 %v1025_v44, %v1025_v44  ;;  %v956_v22 = vmul.f32 %v2494_v23, %v885_v41  ;;  %1597 = vrsqrt.f32 %v764_v53  ;;  %v702_v46 = vmul.f32 0.125, %v604_v38  ;;  %v3046_v38 = vld [vmem:[#allocation17_spill] sm:$0xff] }
 0x184   :  { %v1588_v11 = vpop.eup %1587  ;;  %v1481_v47 = vpack.c.bf16 %v1026_v10, %v1026_v10  ;;  %v957_v59 = vmul.f32 %v2494_v23, %v886_v62  ;;  %v765_v6 = vadd.f32 1e-05, %v701_v32 }
 0x185   :  { %v1590_v33 = vpop.eup %1589  ;;  %1346 = vst.msk [vmem:[%s2962_s3 + $0x8c] sm:$0xf] %vm1310_vm1, %v1480_v20  ;;  %v1027_v48 = vadd.f32 %v2500_v30, %v956_v22  ;;  %v887_v54 = vmul.f32 %v1588_v11, %v2337_v19  ;;  %v766_v14 = vadd.f32 1e-05, %v702_v46  ;;  %v607_v2 = vpop.xlane.xlu1 %606  ;;  %v3047_v46 = vld [vmem:[#allocation18_spill] sm:$0xff] }
 0x186   :  { %v610_v57 = vpop.xlane.xlu0 %609  ;;  %1347 = vst.msk [vmem:[%s2962_s3 + $0x90] sm:$0xf] %vm1310_vm1, %v1481_v47  ;;  %v1028_v9 = vadd.f32 %v2500_v30, %v957_v59  ;;  %v888_v45 = vmul.f32 %v1590_v33, %v2346_v52  ;;  %1599 = vrsqrt.f32 %v765_v6  ;;  %v703_v12 = vmul.f32 0.125, %v607_v2 }
 0x187   :  { %v1482_v60 = vpack.c.bf16 %v1027_v48, %v1027_v48  ;;  %v958_v36 = vmul.f32 %v2494_v23, %v887_v54  ;;  %1601 = vrsqrt.f32 %v766_v14  ;;  %v704_v25 = vmul.f32 0.125, %v610_v57 }
 0x188   :  { %v1592_v19 = vpop.eup %1591  ;;  %v1483_v58 = vpack.c.bf16 %v1028_v9, %v1028_v9  ;;  %v959_v24 = vmul.f32 %v2494_v23, %v888_v45  ;;  %v767_v17 = vadd.f32 1e-05, %v703_v12  ;;  %v3048_v45 = vld [vmem:[#allocation19_spill] sm:$0xff] }
 0x189   :  { %v1594_v50 = vpop.eup %1593  ;;  %1348 = vst.msk [vmem:[%s2962_s3 + $0x94] sm:$0xf] %vm1310_vm1, %v1482_v60  ;;  %v1029_v52 = vadd.f32 %v2500_v30, %v958_v36  ;;  %v889_v43 = vmul.f32 %v1592_v19, %v2349_v27  ;;  %v768_v31 = vadd.f32 1e-05, %v704_v25  ;;  %v613_v0 = vpop.xlane.xlu1 %612 }
 0x18a   :  { %v616_v42 = vpop.xlane.xlu0 %615  ;;  %1349 = vst.msk [vmem:[%s2962_s3 + $0x98] sm:$0xf] %vm1310_vm1, %v1483_v58  ;;  %v1030_v55 = vadd.f32 %v2500_v30, %v959_v24  ;;  %v890_v61 = vmul.f32 %v1594_v50, %v2358_v56  ;;  %1603 = vrsqrt.f32 %v767_v17  ;;  %v705_v37 = vmul.f32 0.125, %v613_v0  ;;  %v3049_v58 = vld [vmem:[#allocation20_spill] sm:$0xff] }
 0x18b   :  { %v1484_v18 = vpack.c.bf16 %v1029_v52, %v1029_v52  ;;  %v960_v63 = vmul.f32 %v2494_v23, %v889_v43  ;;  %1605 = vrsqrt.f32 %v768_v31  ;;  %v706_v49 = vmul.f32 0.125, %v616_v42 }
 0x18c   :  { %v1596_v27 = vpop.eup %1595  ;;  %v1485_v40 = vpack.c.bf16 %v1030_v55, %v1030_v55  ;;  %v961_v7 = vmul.f32 %v2494_v23, %v890_v61  ;;  %v769_v34 = vadd.f32 1e-05, %v705_v37 }
 0x18d   :  { %v1598_v16 = vpop.eup %1597  ;;  %1350 = vst.msk [vmem:[%s2962_s3 + $0x9c] sm:$0xf] %vm1310_vm1, %v1484_v18  ;;  %v1031_v56 = vadd.f32 %v2500_v30, %v960_v63  ;;  %v891_v5 = vmul.f32 %v1596_v27, %v2361_v35  ;;  %v770_v28 = vadd.f32 1e-05, %v706_v49  ;;  %v619_v51 = vpop.xlane.xlu1 %618  ;;  %v3050_v18 = vld [vmem:[#allocation21_spill] sm:$0xff] }
 0x18e   :  { %v622_v26 = vpop.xlane.xlu0 %621  ;;  %1351 = vst.msk [vmem:[%s2962_s3 + $0xa0] sm:$0xf] %vm1310_vm1, %v1485_v40  ;;  %v1032_v29 = vadd.f32 %v2500_v30, %v961_v7  ;;  %v892_v3 = vmul.f32 %v1598_v16, %v3045_v1  ;;  %1607 = vrsqrt.f32 %v769_v34  ;;  %v707_v4 = vmul.f32 0.125, %v619_v51  ;;  %v3051_v34 = vld [vmem:[#allocation2_spill] sm:$0xff] }
 0x18f   :  { %v1486_v13 = vpack.c.bf16 %v1031_v56, %v1031_v56  ;;  %v962_v21 = vmul.f32 %v2494_v23, %v891_v5  ;;  %1609 = vrsqrt.f32 %v770_v28  ;;  %v708_v8 = vmul.f32 0.125, %v622_v26 }
 0x190   :  { %v1600_v35 = vpop.eup %1599  ;;  %v1487_v15 = vpack.c.bf16 %v1032_v29, %v1032_v29  ;;  %v963_v44 = vmul.f32 %v2494_v23, %v892_v3  ;;  %v771_v41 = vadd.f32 1e-05, %v707_v4 }
 0x191   :  { %v1602_v53 = vpop.eup %1601  ;;  %1352 = vst.msk [vmem:[%s2962_s3 + $0xa4] sm:$0xf] %vm1310_vm1, %v1486_v13  ;;  %v1033_v39 = vadd.f32 %v2500_v30, %v962_v21  ;;  %v893_v10 = vmul.f32 %v1600_v35, %v3046_v38  ;;  %v772_v62 = vadd.f32 1e-05, %v708_v8  ;;  %v625_v32 = vpop.xlane.xlu1 %624  ;;  %v3052_v21 = vld [vmem:[#allocation3_spill] sm:$0xff] }
 0x192   :  { %v628_v20 = vpop.xlane.xlu0 %627  ;;  %1353 = vst.msk [vmem:[%s2962_s3 + $0xa8] sm:$0xf] %vm1310_vm1, %v1487_v15  ;;  %v1034_v22 = vadd.f32 %v2500_v30, %v963_v44  ;;  %v894_v11 = vmul.f32 %v1602_v53, %v3047_v46  ;;  %1611 = vrsqrt.f32 %v771_v41  ;;  %v709_v47 = vmul.f32 0.125, %v625_v32  ;;  %v3053_v53 = vld [vmem:[#allocation4_spill] sm:$0xff] }
 0x193   :  { %v1488_v59 = vpack.c.bf16 %v1033_v39, %v1033_v39  ;;  %v964_v6 = vmul.f32 %v2494_v23, %v893_v10  ;;  %1613 = vrsqrt.f32 %v772_v62  ;;  %v710_v33 = vmul.f32 0.125, %v628_v20  ;;  %v2860_v10 = vld [vmem:[%s2960_s1] ss:$0 sm:$0xff] }
 0x194   :  { %v1604_v48 = vpop.eup %1603  ;;  %v1489_v54 = vpack.c.bf16 %v1034_v22, %v1034_v22  ;;  %v965_v14 = vmul.f32 %v2494_v23, %v894_v11  ;;  %v773_v2 = vadd.f32 1e-05, %v709_v47 }
 0x195   :  { %v1606_v57 = vpop.eup %1605  ;;  %1354 = vst.msk [vmem:[%s2962_s3 + $0xac] sm:$0xf] %vm1310_vm1, %v1488_v59  ;;  %v1035_v9 = vadd.f32 %v2500_v30, %v964_v6  ;;  %v895_v12 = vmul.f32 %v1604_v48, %v3048_v45  ;;  %v774_v60 = vadd.f32 1e-05, %v710_v33  ;;  %v631_v36 = vpop.xlane.xlu1 %630  ;;  %v3054_v6 = vld [vmem:[#allocation5_spill] sm:$0xff] }
 0x196   :  { %v634_v25 = vpop.xlane.xlu0 %633  ;;  %1355 = vst.msk [vmem:[%s2962_s3 + $0xb0] sm:$0xf] %vm1310_vm1, %v1489_v54  ;;  %v1036_v19 = vadd.f32 %v2500_v30, %v965_v14  ;;  %v896_v24 = vmul.f32 %v1606_v57, %v3049_v58  ;;  %1615 = vrsqrt.f32 %v773_v2  ;;  %v711_v17 = vmul.f32 0.125, %v631_v36  ;;  %v3055_v57 = vld [vmem:[#allocation6_spill] sm:$0xff] }
 0x197   :  { %v1490_v50 = vpack.c.bf16 %v1035_v9, %v1035_v9  ;;  %v966_v52 = vmul.f32 %v2494_v23, %v895_v12  ;;  %1617 = vrsqrt.f32 %v774_v60  ;;  %v712_v43 = vmul.f32 0.125, %v634_v25 }
 0x198   :  { %v1608_v31 = vpop.eup %1607  ;;  %v1491_v0 = vpack.c.bf16 %v1036_v19, %v1036_v19  ;;  %v967_v42 = vmul.f32 %v2494_v23, %v896_v24  ;;  %v775_v55 = vadd.f32 1e-05, %v711_v17 }
 0x199   :  { %v1610_v61 = vpop.eup %1609  ;;  %1356 = vst.msk [vmem:[%s2962_s3 + $0xb4] sm:$0xf] %vm1310_vm1, %v1490_v50  ;;  %v1037_v37 = vadd.f32 %v2500_v30, %v966_v52  ;;  %v897_v63 = vmul.f32 %v1608_v31, %v3050_v18  ;;  %v776_v49 = vadd.f32 1e-05, %v712_v43  ;;  %v637_v27 = vpop.xlane.xlu1 %636  ;;  %v3056_v52 = vld [vmem:[#allocation7_spill] sm:$0xff] }
 0x19a   :  { %v640_v40 = vpop.xlane.xlu0 %639  ;;  %1357 = vst.msk [vmem:[%s2962_s3 + $0xb8] sm:$0xf] %vm1310_vm1, %v1491_v0  ;;  %v1038_v7 = vadd.f32 %v2500_v30, %v967_v42  ;;  %v898_v16 = vmul.f32 %v1610_v61, %v3051_v34  ;;  %1619 = vrsqrt.f32 %v775_v55  ;;  %v713_v56 = vmul.f32 0.125, %v637_v27  ;;  %v3057_v55 = vld [vmem:[#allocation8_spill] sm:$0xff] }
 0x19b   :  { %v1492_v5 = vpack.c.bf16 %v1037_v37, %v1037_v37  ;;  %v968_v28 = vmul.f32 %v2494_v23, %v897_v63  ;;  %1621 = vrsqrt.f32 %v776_v49  ;;  %v714_v51 = vmul.f32 0.125, %v640_v40 }
 0x19c   :  { %v1612_v26 = vpop.eup %1611  ;;  %v1493_v29 = vpack.c.bf16 %v1038_v7, %v1038_v7  ;;  %v969_v1 = vmul.f32 %v2494_v23, %v898_v16  ;;  %v777_v3 = vadd.f32 1e-05, %v713_v56  ;;  %v2853_v23 = vld [vmem:[%s2961_s2] ss:$0 sm:$0xff]  ;;  %v3058_v56 = vld [vmem:[#allocation9_spill] sm:$0xff] }
 0x19d   :  { %v1614_v4 = vpop.eup %1613  ;;  %1358 = vst.msk [vmem:[%s2962_s3 + $0xbc] sm:$0xf] %vm1310_vm1, %v1492_v5  ;;  %v1039_v13 = vadd.f32 %v2500_v30, %v968_v28  ;;  %v899_v8 = vmul.f32 %v1612_v26, %v3052_v21  ;;  %v778_v35 = vadd.f32 1e-05, %v714_v51  ;;  %v643_v15 = vpop.xlane.xlu1 %642  ;;  %v3059_v51 = vld [vmem:[#allocation10_spill] sm:$0xff] }
 0x19e   :  { %v646_v44 = vpop.xlane.xlu0 %645  ;;  %1359 = vst.msk [vmem:[%s2962_s3 + $0xc0] sm:$0xf] %vm1310_vm1, %v1493_v29  ;;  %v1040_v41 = vadd.f32 %v2853_v23, %v969_v1  ;;  %v900_v39 = vmul.f32 %v1614_v4, %v3053_v53  ;;  %1623 = vrsqrt.f32 %v777_v3  ;;  %v715_v30 = vmul.f32 0.125, %v643_v15 }
 0x19f   :  { %v1494_v38 = vpack.c.bf16 %v1039_v13, %v1039_v13  ;;  %v970_v62 = vmul.f32 %v2860_v10, %v899_v8  ;;  %1625 = vrsqrt.f32 %v778_v35  ;;  %v716_v32 = vmul.f32 0.125, %v646_v44  ;;  %v3060_v35 = vld [vmem:[#allocation11_spill] sm:$0xff] }
 0x1a0   :  { %v1616_v20 = vpop.eup %1615  ;;  %v1495_v22 = vpack.c.bf16 %v1040_v41, %v1040_v41  ;;  %v971_v46 = vmul.f32 %v2860_v10, %v900_v39  ;;  %v779_v11 = vadd.f32 1e-05, %v715_v30  ;;  %v3061_v41 = vld [vmem:[#allocation12_spill] sm:$0xff] }
 0x1a1   :  { %v1618_v47 = vpop.eup %1617  ;;  %1360 = vst.msk [vmem:[%s2962_s3 + $0xc4] sm:$0xf] %vm1310_vm1, %v1494_v38  ;;  %v1041_v59 = vadd.f32 %v2853_v23, %v970_v62  ;;  %v901_v33 = vmul.f32 %v1616_v20, %v3054_v6  ;;  %v780_v48 = vadd.f32 1e-05, %v716_v32  ;;  %v649_v54 = vpop.xlane.xlu1 %648 }
 0x1a2   :  { %v652_v14 = vpop.xlane.xlu0 %651  ;;  %1361 = vst.msk [vmem:[%s2962_s3 + $0xc8] sm:$0xf] %vm1310_vm1, %v1495_v22  ;;  %v1042_v2 = vadd.f32 %v2853_v23, %v971_v46  ;;  %v902_v9 = vmul.f32 %v1618_v47, %v3055_v57  ;;  %1627 = vrsqrt.f32 %v779_v11  ;;  %v717_v45 = vmul.f32 0.125, %v649_v54  ;;  %v3062_v46 = vld [vmem:[#allocation13_spill] sm:$0xff] }
 0x1a3   :  { %v1496_v12 = vpack.c.bf16 %v1041_v59, %v1041_v59  ;;  %v972_v60 = vmul.f32 %v2860_v10, %v901_v33  ;;  %1629 = vrsqrt.f32 %v780_v48  ;;  %v718_v36 = vmul.f32 0.125, %v652_v14  ;;  %v3063_v59 = vld [vmem:[#allocation14_spill] sm:$0xff] }
 0x1a4   :  { %v1620_v25 = vpop.eup %1619  ;;  %v1497_v19 = vpack.c.bf16 %v1042_v2, %v1042_v2  ;;  %v973_v58 = vmul.f32 %v2860_v10, %v902_v9  ;;  %v781_v24 = vadd.f32 1e-05, %v717_v45  ;;  %v3064_v9 = vld [vmem:[#allocation22_spill] sm:$0xff] }
 0x1a5   :  { %v1622_v17 = vpop.eup %1621  ;;  %1362 = vst.msk [vmem:[%s2962_s3 + $0xcc] sm:$0xf] %vm1310_vm1, %v1496_v12  ;;  %v1043_v50 = vadd.f32 %v2853_v23, %v972_v60  ;;  %v903_v43 = vmul.f32 %v1620_v25, %v3056_v52  ;;  %v782_v31 = vadd.f32 1e-05, %v718_v36  ;;  %v655_v0 = vpop.xlane.xlu1 %654 }
 0x1a6   :  { %1363 = vst.msk [vmem:[%s2962_s3 + $0xd0] sm:$0xf] %vm1310_vm1, %v1497_v19  ;;  %v1044_v42 = vadd.f32 %v2853_v23, %v973_v58  ;;  %v904_v61 = vmul.f32 %v1622_v17, %v3057_v55  ;;  %1631 = vrsqrt.f32 %v781_v24  ;;  %v719_v37 = vmul.f32 0.125, %v655_v0 }
 0x1a7   :  { %v1498_v18 = vpack.c.bf16 %v1043_v50, %v1043_v50  ;;  %v974_v63 = vmul.f32 %v2860_v10, %v903_v43  ;;  %1633 = vrsqrt.f32 %v782_v31 }
 0x1a8   :  { %v1624_v49 = vpop.eup %1623  ;;  %v1499_v27 = vpack.c.bf16 %v1044_v42, %v1044_v42  ;;  %v975_v40 = vmul.f32 %v2860_v10, %v904_v61  ;;  %v783_v7 = vadd.f32 1e-05, %v719_v37 }
 0x1a9   :  { %v1626_v34 = vpop.eup %1625  ;;  %1364 = vst.msk [vmem:[%s2962_s3 + $0xd4] sm:$0xf] %vm1310_vm1, %v1498_v18  ;;  %v1045_v16 = vadd.f32 %v2853_v23, %v974_v63  ;;  %v905_v5 = vmul.f32 %v1624_v49, %v3058_v56 }
 0x1aa   :  { %1365 = vst.msk [vmem:[%s2962_s3 + $0xd8] sm:$0xf] %vm1310_vm1, %v1499_v27  ;;  %v1046_v28 = vadd.f32 %v2853_v23, %v975_v40  ;;  %v906_v26 = vmul.f32 %v1626_v34, %v3059_v51  ;;  %1635 = vrsqrt.f32 %v783_v7 }
 0x1ab   :  { %v1500_v29 = vpack.c.bf16 %v1045_v16, %v1045_v16  ;;  %v976_v1 = vmul.f32 %v2860_v10, %v905_v5 }
 0x1ac   :  { %v1628_v3 = vpop.eup %1627  ;;  %v1501_v4 = vpack.c.bf16 %v1046_v28, %v1046_v28  ;;  %v977_v13 = vmul.f32 %v2860_v10, %v906_v26 }
 0x1ad   :  { %v1630_v21 = vpop.eup %1629  ;;  %1366 = vst.msk [vmem:[%s2962_s3 + $0xdc] sm:$0xf] %vm1310_vm1, %v1500_v29  ;;  %v1047_v8 = vadd.f32 %v2853_v23, %v976_v1  ;;  %v907_v15 = vmul.f32 %v1628_v3, %v3060_v35 }
 0x1ae   :  { %1367 = vst.msk [vmem:[%s2962_s3 + $0xe0] sm:$0xf] %vm1310_vm1, %v1501_v4  ;;  %v1048_v44 = vadd.f32 %v2853_v23, %v977_v13  ;;  %v908_v53 = vmul.f32 %v1630_v21, %v3061_v41 }
 0x1af   :  { %v1502_v39 = vpack.c.bf16 %v1047_v8, %v1047_v8  ;;  %v978_v30 = vmul.f32 %v2860_v10, %v907_v15 }
 0x1b0   :  { %v1632_v38 = vpop.eup %1631  ;;  %v1503_v62 = vpack.c.bf16 %v1048_v44, %v1048_v44  ;;  %v979_v32 = vmul.f32 %v2860_v10, %v908_v53 }
 0x1b1   :  { %v1634_v20 = vpop.eup %1633  ;;  %1368 = vst.msk [vmem:[%s2962_s3 + $0xe4] sm:$0xf] %vm1310_vm1, %v1502_v39  ;;  %v1049_v22 = vadd.f32 %v2853_v23, %v978_v30  ;;  %v909_v11 = vmul.f32 %v1632_v38, %v3062_v46 }
 0x1b2   :  { %1369 = vst.msk [vmem:[%s2962_s3 + $0xe8] sm:$0xf] %vm1310_vm1, %v1503_v62  ;;  %v1050_v47 = vadd.f32 %v2853_v23, %v979_v32  ;;  %v910_v6 = vmul.f32 %v1634_v20, %v3063_v59 }
 0x1b3   :  { %v1504_v33 = vpack.c.bf16 %v1049_v22, %v1049_v22  ;;  %v980_v48 = vmul.f32 %v2860_v10, %v909_v11 }
 0x1b4   :  { %v1636_v54 = vpop.eup %1635  ;;  %v1505_v14 = vpack.c.bf16 %v1050_v47, %v1050_v47  ;;  %v981_v2 = vmul.f32 %v2860_v10, %v910_v6 }
 0x1b5   :  { %1370 = vst.msk [vmem:[%s2962_s3 + $0xec] sm:$0xf] %vm1310_vm1, %v1504_v33  ;;  %v1051_v57 = vadd.f32 %v2853_v23, %v980_v48  ;;  %v911_v45 = vmul.f32 %v1636_v54, %v3064_v9 }
 0x1b6   :  { %1371 = vst.msk [vmem:[%s2962_s3 + $0xf0] sm:$0xf] %vm1310_vm1, %v1505_v14  ;;  %v1052_v12 = vadd.f32 %v2853_v23, %v981_v2 }
 0x1b7   :  { %v1506_v60 = vpack.c.bf16 %v1051_v57, %v1051_v57  ;;  %v982_v36 = vmul.f32 %v2860_v10, %v911_v45 }
 0x1b8   :  { %v1507_v25 = vpack.c.bf16 %v1052_v12, %v1052_v12 }
 0x1b9   :  { %1372 = vst.msk [vmem:[%s2962_s3 + $0xf4] sm:$0xf] %vm1310_vm1, %v1506_v60  ;;  %v1053_v19 = vadd.f32 %v2853_v23, %v982_v36 }
 0x1ba   :  { %1373 = vst.msk [vmem:[%s2962_s3 + $0xf8] sm:$0xf] %vm1310_vm1, %v1507_v25 }
 0x1bb   :  { %v1508_v58 = vpack.c.bf16 %v1053_v19, %v1053_v19 }
 0x1bd   :  { %1374 = vst.msk [vmem:[%s2962_s3 + $0xfc] sm:$0xf] %vm1310_vm1, %v1508_v58 }

</bundles_post_ra>
